<compile_context>
chip_gen: v7x
topology: tpu7x:2x2x1
jax: 0.10.0
libtpu: 0.0.40
codegen_flags: <defaults>
</compile_context>

<pallas_src>
from typing import Optional

import jax
import jax.numpy as jnp
from jax import lax
from jax.experimental import pallas as pl
from jax.experimental.pallas import tpu as pltpu


# ----------------------------------------------------------------------------
# make_divisible (verbatim semantics from the reference implementation)
# ----------------------------------------------------------------------------
def make_divisible(value: float, divisor: int, min_value: Optional[float] = None,
                   round_down_protect: bool = True) -> int:
    if min_value is None:
        min_value = divisor
    new_value = max(min_value, int(value + divisor / 2) // divisor * divisor)
    if round_down_protect and new_value < 0.9 * value:
        new_value += divisor
    return int(new_value)


# ----------------------------------------------------------------------------
# Fused UIB Pallas kernel (one batch element per grid step)
# ----------------------------------------------------------------------------
def _make_uib_kernel(*, H, W, k_start, k_mid):
    """Builds the fused kernel body for static spatial size / dw kernel sizes."""
    HW = H * W
    has_start = k_start > 0
    has_mid = k_mid > 0

    def depthwise(z, w_ct, k, col):
        # z:    (C, HW) f32 activation, channel-major flat spatial (lane axis = H*W).
        # w_ct: (C, k*k) depthwise taps.  Cross-correlation, stride 1, 'same' zero padding.
        C = z.shape[0]
        pd = (k - 1) // 2
        m0 = pd * W + pd                              # max |flat tap offset|
        if pd > 0:
            zpad = jnp.zeros((C, m0), z.dtype)
            z_ext = jnp.concatenate([zpad, z, zpad], axis=1)   # (C, HW + 2*m0), zeros cover H halo
        else:
            z_ext = z
        acc = jnp.zeros((C, HW), jnp.float32)
        for di in range(k):
            for dj in range(k):
                off = (di - pd) * W + (dj - pd)
                # shifted[c, p] == z[c, p + off] (or 0 past the H boundary): static lane shift.
                shifted = z_ext[:, m0 + off: m0 + off + HW]
                # W-boundary mask: kill contributions that wrapped across a row.
                ww = col + (dj - pd)
                valid = ((ww >= 0) & (ww < W)).astype(jnp.float32)   # (1, HW)
                tap = w_ct[:, di * k + dj: di * k + dj + 1]          # (C, 1)
                acc = acc + shifted * (valid * tap)
        return acc

    def bn_act(z, s_ref, b_ref, relu6):
        z = z * s_ref[...] + b_ref[...]               # per-channel scale/bias, (C,1) broadcast
        if relu6:
            z = jnp.minimum(jnp.maximum(z, 0.0), 6.0)
        return z

    def kernel(*refs):
        o_ref = refs[-1]
        ins = refs[:-1]
        i = 0
        x_ref = ins[i]; i += 1
        if has_start:
            ws_ref, ss_ref, bs_ref = ins[i:i + 3]; i += 3
        we_ref, se_ref, be_ref = ins[i:i + 3]; i += 3
        if has_mid:
            wm_ref, sm_ref, bm_ref = ins[i:i + 3]; i += 3
        wp_ref, sp_ref, bp_ref = ins[i:i + 3]; i += 3

        # In-row column index of every flat spatial position (for W-boundary masking).
        col = lax.broadcasted_iota(jnp.int32, (1, HW), 1) % W

        y = x_ref[0].astype(jnp.float32)              # (Cin, HW)

        if has_start:                                 # start dw + BN (no activation)
            y = bn_act(depthwise(y, ws_ref[...], k_start, col), ss_ref, bs_ref, relu6=False)

        # expand 1x1 + BN + ReLU6 (MXU, f32 accumulation)
        y = bn_act(jnp.dot(we_ref[...], y, preferred_element_type=jnp.float32),
                   se_ref, be_ref, relu6=True)

        if has_mid:                                   # middle dw + BN + ReLU6
            y = bn_act(depthwise(y, wm_ref[...], k_mid, col), sm_ref, bm_ref, relu6=True)

        # proj 1x1 + BN (no activation)
        y = bn_act(jnp.dot(wp_ref[...], y, preferred_element_type=jnp.float32),
                   sp_ref, bp_ref, relu6=False)

        o_ref[0] = y.astype(o_ref.dtype)

    return kernel


# ----------------------------------------------------------------------------
# Parameter construction (deterministic, synthetic) and module wrapper
# ----------------------------------------------------------------------------
_BN_EPS = 1e-5


def _init_bn(key, c):
    k1, k2, k3, k4 = jax.random.split(key, 4)
    gamma = 1.0 + 0.1 * jax.random.normal(k1, (c,), jnp.float32)
    beta = 0.1 * jax.random.normal(k2, (c,), jnp.float32)
    mean = 0.1 * jax.random.normal(k3, (c,), jnp.float32)
    var = 0.5 + jnp.abs(jax.random.normal(k4, (c,), jnp.float32))
    return dict(gamma=gamma, beta=beta, mean=mean, var=var)


def _fold_bn(bn):
    scale = bn["gamma"] / jnp.sqrt(bn["var"] + _BN_EPS)
    bias = bn["beta"] - bn["mean"] * scale
    return scale, bias


class UniversalInvertedBottleneckBlockPallas:
    """JAX/Pallas re-implementation of UniversalInvertedBottleneckBlock (eval-mode BN)."""

    def __init__(self, key, inp, oup, start_dw_kernel_size=0, middle_dw_kernel_size=3,
                 middle_dw_downsample=True, stride=1, expand_ratio=2):
        # TODO(synk): stride>1 / middle_dw_downsample depthwise downsampling not implemented;
        #             this kernel covers the stride=1 UIB block (as exercised by the demo).
        assert stride == 1, "only stride=1 implemented"
        if start_dw_kernel_size:
            assert start_dw_kernel_size % 2 == 1, "odd start dw kernel size only"
        if middle_dw_kernel_size:
            assert middle_dw_kernel_size % 2 == 1, "odd middle dw kernel size only"
        self.inp = inp
        self.oup = oup
        self.start_dw_kernel_size = start_dw_kernel_size
        self.middle_dw_kernel_size = middle_dw_kernel_size
        expand_filters = make_divisible(inp * expand_ratio, 8)
        self.expand_filters = expand_filters

        keys = jax.random.split(key, 8)
        p = {}
        if start_dw_kernel_size:
            k = start_dw_kernel_size
            p["w_start"] = 0.1 * jax.random.normal(keys[0], (k, k, inp), jnp.float32)
            p["bn_start"] = _init_bn(keys[1], inp)
        p["w_expand"] = 0.1 * jax.random.normal(keys[2], (inp, expand_filters), jnp.float32)
        p["bn_expand"] = _init_bn(keys[3], expand_filters)
        if middle_dw_kernel_size:
            k = middle_dw_kernel_size
            p["w_middle"] = 0.1 * jax.random.normal(keys[4], (k, k, expand_filters), jnp.float32)
            p["bn_middle"] = _init_bn(keys[5], expand_filters)
        p["w_proj"] = 0.1 * jax.random.normal(keys[6], (expand_filters, oup), jnp.float32)
        p["bn_proj"] = _init_bn(keys[7], oup)
        self.params = p

    def __call__(self, x_nchw):
        p = self.params
        N, Cin, H, W = x_nchw.shape
        assert Cin == self.inp
        HW = H * W
        E = self.expand_filters

        # NCHW -> channel-major flat (N, C, H*W): free contiguous reshape, no transpose.
        operands = [x_nchw.reshape(N, Cin, HW)]
        in_specs = [pl.BlockSpec((1, Cin, HW), lambda n: (n, 0, 0))]

        def add(arr):   # small per-block constants: full-array blocks, grid-invariant
            operands.append(arr)
            in_specs.append(pl.BlockSpec(arr.shape, lambda n: (0, 0)))

        if self.start_dw_kernel_size:
            k = self.start_dw_kernel_size
            s, b = _fold_bn(p["bn_start"])
            add(p["w_start"].reshape(k * k, Cin).T)        # (Cin, k*k)
            add(s.reshape(Cin, 1)); add(b.reshape(Cin, 1))
        s, b = _fold_bn(p["bn_expand"])
        add(p["w_expand"].T)                               # (E, Cin)
        add(s.reshape(E, 1)); add(b.reshape(E, 1))
        if self.middle_dw_kernel_size:
            k = self.middle_dw_kernel_size
            s, b = _fold_bn(p["bn_middle"])
            add(p["w_middle"].reshape(k * k, E).T)         # (E, k*k)
            add(s.reshape(E, 1)); add(b.reshape(E, 1))
        s, b = _fold_bn(p["bn_proj"])
        add(p["w_proj"].T)                                 # (oup, E)
        add(s.reshape(self.oup, 1)); add(b.reshape(self.oup, 1))

        kernel = _make_uib_kernel(H=H, W=W,
                                  k_start=self.start_dw_kernel_size,
                                  k_mid=self.middle_dw_kernel_size)

        # TODO(synk): for large H*W, add a second (row-tile + halo) grid axis via manual DMA
        #             to bound VMEM (v7x: 64 MiB) and give the pipeline more parallel steps.
        out_flat = pl.pallas_call(
            kernel,
            out_shape=jax.ShapeDtypeStruct((N, self.oup, HW), x_nchw.dtype),
            grid=(N,),
            in_specs=in_specs,
            out_specs=pl.BlockSpec((1, self.oup, HW), lambda n: (n, 0, 0)),
            compiler_params=pltpu.CompilerParams(
                dimension_semantics=("parallel",),
                vmem_limit_bytes=32 * 1024 * 1024),
        )(*operands)
        return out_flat.reshape(N, self.oup, H, W)

    # Pure-JAX reference (same eval-mode semantics) for validation.
    def reference(self, x_nchw):
        p = self.params
        x = jnp.transpose(x_nchw, (0, 2, 3, 1))

        def bn(y, bnp):
            s, b = _fold_bn(bnp)
            return y * s + b

        def dw(y, w, k):
            pad = (k - 1) // 2
            return lax.conv_general_dilated(
                y, w[:, :, None, :], (1, 1), [(pad, pad), (pad, pad)],
                dimension_numbers=("NHWC", "HWIO", "NHWC"),
                feature_group_count=y.shape[-1])

        if self.start_dw_kernel_size:
            x = bn(dw(x, p["w_start"], self.start_dw_kernel_size), p["bn_start"])
        x = jnp.minimum(jnp.maximum(bn(jnp.einsum("nhwc,cd->nhwd", x, p["w_expand"]),
                                       p["bn_expand"]), 0.0), 6.0)
        if self.middle_dw_kernel_size:
            x = jnp.minimum(jnp.maximum(bn(dw(x, p["w_middle"], self.middle_dw_kernel_size),
                                           p["bn_middle"]), 0.0), 6.0)
        x = bn(jnp.einsum("nhwc,cd->nhwd", x, p["w_proj"]), p["bn_proj"])
        return jnp.transpose(x, (0, 3, 1, 2))


# ----------------------------------------------------------------------------
# Main
# ----------------------------------------------------------------------------
if __name__ == "__main__":
    key = jax.random.PRNGKey(0)
    k_in, k_params = jax.random.split(key)

    N, inp, H, W = 2, 8, 16, 16
    oup = 16
    x = jax.random.normal(k_in, (N, inp, H, W), jnp.float32)  # NCHW, like PyTorch

    block = UniversalInvertedBottleneckBlockPallas(
        k_params, inp=inp, oup=oup,
        start_dw_kernel_size=3, middle_dw_kernel_size=3,
        middle_dw_downsample=True, stride=1, expand_ratio=2)

    out = jax.block_until_ready(jax.jit(block.__call__)(x))
    ref = jax.block_until_ready(block.reference(x))

    assert out.shape == (N, oup, H, W), out.shape
    if not jnp.allclose(out, ref, atol=1e-4, rtol=1e-4):
        max_err = float(jnp.max(jnp.abs(out - ref)))
        raise AssertionError(f"Pallas output mismatch vs reference, max_err={max_err}")

    print("KERNEL_OK")
</pallas_src>

<mosaic_0001>
module attributes {stable_mosaic.version = 11 : i64} {
  func.func @kernel(%arg0: i32, %arg1: memref<1x8x256xf32, #tpu.memory_space<vmem>>, %arg2: memref<8x9xf32, #tpu.memory_space<vmem>>, %arg3: memref<8x1xf32, #tpu.memory_space<vmem>>, %arg4: memref<8x1xf32, #tpu.memory_space<vmem>>, %arg5: memref<16x8xf32, #tpu.memory_space<vmem>>, %arg6: memref<16x1xf32, #tpu.memory_space<vmem>>, %arg7: memref<16x1xf32, #tpu.memory_space<vmem>>, %arg8: memref<16x9xf32, #tpu.memory_space<vmem>>, %arg9: memref<16x1xf32, #tpu.memory_space<vmem>>, %arg10: memref<16x1xf32, #tpu.memory_space<vmem>>, %arg11: memref<16x16xf32, #tpu.memory_space<vmem>>, %arg12: memref<16x1xf32, #tpu.memory_space<vmem>>, %arg13: memref<16x1xf32, #tpu.memory_space<vmem>>, %arg14: memref<1x16x256xf32, #tpu.memory_space<vmem>>) attributes {dimension_semantics = [#tpu.dimension_semantics<parallel>], iteration_bounds = array<i64: 2>, scalar_prefetch = 0 : i64, scratch_operands = 0 : i64, tpu.core_type = #tpu.core_type<tc>, window_params = [{transform_indices = @transform_0, window_bounds = array<i64: 1, 8, 256>}, {pipeline_mode = #tpu.pipeline_mode<synchronous>, transform_indices = @transform_1, window_bounds = array<i64: 8, 9>}, {pipeline_mode = #tpu.pipeline_mode<synchronous>, transform_indices = @transform_2, window_bounds = array<i64: 8, 1>}, {pipeline_mode = #tpu.pipeline_mode<synchronous>, transform_indices = @transform_3, window_bounds = array<i64: 8, 1>}, {pipeline_mode = #tpu.pipeline_mode<synchronous>, transform_indices = @transform_4, window_bounds = array<i64: 16, 8>}, {pipeline_mode = #tpu.pipeline_mode<synchronous>, transform_indices = @transform_5, window_bounds = array<i64: 16, 1>}, {pipeline_mode = #tpu.pipeline_mode<synchronous>, transform_indices = @transform_6, window_bounds = array<i64: 16, 1>}, {pipeline_mode = #tpu.pipeline_mode<synchronous>, transform_indices = @transform_7, window_bounds = array<i64: 16, 9>}, {pipeline_mode = #tpu.pipeline_mode<synchronous>, transform_indices = @transform_8, window_bounds = array<i64: 16, 1>}, {pipeline_mode = #tpu.pipeline_mode<synchronous>, transform_indices = @transform_9, window_bounds = array<i64: 16, 1>}, {pipeline_mode = #tpu.pipeline_mode<synchronous>, transform_indices = @transform_10, window_bounds = array<i64: 16, 16>}, {pipeline_mode = #tpu.pipeline_mode<synchronous>, transform_indices = @transform_11, window_bounds = array<i64: 16, 1>}, {pipeline_mode = #tpu.pipeline_mode<synchronous>, transform_indices = @transform_12, window_bounds = array<i64: 16, 1>}, {transform_indices = @transform_13, window_bounds = array<i64: 1, 16, 256>}]} {
    %0 = tpu.iota {dimensions = array<i32: 1>} : vector<1x256xi32>
    %c16_i32 = arith.constant 16 : i32
    %c0_i32 = arith.constant 0 : i32
    %1 = arith.cmpi eq, %c16_i32, %c0_i32 : i32
    %c1_i32 = arith.constant 1 : i32
    %2 = arith.select %1, %c1_i32, %c16_i32 : i32
    %3 = vector.broadcast %2 : i32 to vector<1x256xi32>
    %4 = arith.remsi %0, %3 : vector<1x256xi32>
    %c0_i32_0 = arith.constant 0 : i32
    %5 = vector.broadcast %c0_i32_0 : i32 to vector<1x256xi32>
    %6 = arith.cmpi ne, %4, %5 : vector<1x256xi32>
    %c0_i32_1 = arith.constant 0 : i32
    %7 = vector.broadcast %c0_i32_1 : i32 to vector<1x256xi32>
    %8 = arith.cmpi slt, %4, %7 : vector<1x256xi32>
    %c0_i32_2 = arith.constant 0 : i32
    %9 = arith.cmpi slt, %2, %c0_i32_2 : i32
    %10 = vector.broadcast %9 : i1 to vector<1x256xi1>
    %11 = vector.broadcast %10 : vector<1x256xi1> to vector<1x256xi1>
    %12 = arith.xori %8, %11 : vector<1x256xi1>
    %13 = arith.andi %12, %6 : vector<1x256xi1>
    %14 = vector.broadcast %2 : i32 to vector<1x256xi32>
    %15 = arith.addi %4, %14 : vector<1x256xi32>
    %16 = arith.select %13, %15, %4 : vector<1x256xi1>, vector<1x256xi32>
    %c0 = arith.constant 0 : index
    %c0_3 = arith.constant 0 : index
    %c0_4 = arith.constant 0 : index
    %17 = vector.load %arg1[%c0, %c0_3, %c0_4] : memref<1x8x256xf32, #tpu.memory_space<vmem>>, vector<1x8x256xf32>
    %18 = vector.shape_cast %17 : vector<1x8x256xf32> to vector<8x256xf32>
    %c0_5 = arith.constant 0 : index
    %c0_6 = arith.constant 0 : index
    %19 = vector.load %arg2[%c0_5, %c0_6] : memref<8x9xf32, #tpu.memory_space<vmem>>, vector<8x9xf32>
    %cst = arith.constant 0.000000e+00 : f32
    %20 = vector.broadcast %cst : f32 to vector<8x17xf32>
    %21 = tpu.concatenate %20, %18, %20 in 1 : vector<8x17xf32>, vector<8x256xf32>, vector<8x17xf32> -> vector<8x290xf32>
    %cst_7 = arith.constant 0.000000e+00 : f32
    %22 = vector.broadcast %cst_7 : f32 to vector<8x256xf32>
    %23 = vector.extract_strided_slice %21 {offsets = [0, 0], sizes = [8, 256], strides = [1, 1]} : vector<8x290xf32> to vector<8x256xf32>
    %c-1_i32 = arith.constant -1 : i32
    %24 = vector.broadcast %c-1_i32 : i32 to vector<1x256xi32>
    %25 = arith.addi %16, %24 : vector<1x256xi32>
    %c0_i32_8 = arith.constant 0 : i32
    %26 = vector.broadcast %c0_i32_8 : i32 to vector<1x256xi32>
    %27 = arith.cmpi sge, %25, %26 : vector<1x256xi32>
    %c16_i32_9 = arith.constant 16 : i32
    %28 = vector.broadcast %c16_i32_9 : i32 to vector<1x256xi32>
    %29 = arith.cmpi slt, %25, %28 : vector<1x256xi32>
    %30 = arith.andi %27, %29 : vector<1x256xi1>
    %31 = arith.extui %30 : vector<1x256xi1> to vector<1x256xi32>
    %32 = arith.sitofp %31 : vector<1x256xi32> to vector<1x256xf32>
    %33 = vector.extract_strided_slice %19 {offsets = [0, 0], sizes = [8, 1], strides = [1, 1]} : vector<8x9xf32> to vector<8x1xf32>
    %34 = vector.broadcast %32 : vector<1x256xf32> to vector<8x256xf32>
    %35 = vector.broadcast %33 : vector<8x1xf32> to vector<8x256xf32>
    %36 = arith.mulf %34, %35 : vector<8x256xf32>
    %37 = arith.mulf %23, %36 : vector<8x256xf32>
    %38 = arith.addf %22, %37 : vector<8x256xf32>
    %39 = vector.extract_strided_slice %21 {offsets = [0, 1], sizes = [8, 256], strides = [1, 1]} : vector<8x290xf32> to vector<8x256xf32>
    %c0_i32_10 = arith.constant 0 : i32
    %40 = vector.broadcast %c0_i32_10 : i32 to vector<1x256xi32>
    %41 = arith.addi %16, %40 : vector<1x256xi32>
    %c0_i32_11 = arith.constant 0 : i32
    %42 = vector.broadcast %c0_i32_11 : i32 to vector<1x256xi32>
    %43 = arith.cmpi sge, %41, %42 : vector<1x256xi32>
    %c16_i32_12 = arith.constant 16 : i32
    %44 = vector.broadcast %c16_i32_12 : i32 to vector<1x256xi32>
    %45 = arith.cmpi slt, %41, %44 : vector<1x256xi32>
    %46 = arith.andi %43, %45 : vector<1x256xi1>
    %47 = arith.extui %46 : vector<1x256xi1> to vector<1x256xi32>
    %48 = arith.sitofp %47 : vector<1x256xi32> to vector<1x256xf32>
    %49 = vector.extract_strided_slice %19 {offsets = [0, 1], sizes = [8, 1], strides = [1, 1]} : vector<8x9xf32> to vector<8x1xf32>
    %50 = vector.broadcast %48 : vector<1x256xf32> to vector<8x256xf32>
    %51 = vector.broadcast %49 : vector<8x1xf32> to vector<8x256xf32>
    %52 = arith.mulf %50, %51 : vector<8x256xf32>
    %53 = arith.mulf %39, %52 : vector<8x256xf32>
    %54 = arith.addf %38, %53 : vector<8x256xf32>
    %55 = vector.extract_strided_slice %21 {offsets = [0, 2], sizes = [8, 256], strides = [1, 1]} : vector<8x290xf32> to vector<8x256xf32>
    %c1_i32_13 = arith.constant 1 : i32
    %56 = vector.broadcast %c1_i32_13 : i32 to vector<1x256xi32>
    %57 = arith.addi %16, %56 : vector<1x256xi32>
    %c0_i32_14 = arith.constant 0 : i32
    %58 = vector.broadcast %c0_i32_14 : i32 to vector<1x256xi32>
    %59 = arith.cmpi sge, %57, %58 : vector<1x256xi32>
    %c16_i32_15 = arith.constant 16 : i32
    %60 = vector.broadcast %c16_i32_15 : i32 to vector<1x256xi32>
    %61 = arith.cmpi slt, %57, %60 : vector<1x256xi32>
    %62 = arith.andi %59, %61 : vector<1x256xi1>
    %63 = arith.extui %62 : vector<1x256xi1> to vector<1x256xi32>
    %64 = arith.sitofp %63 : vector<1x256xi32> to vector<1x256xf32>
    %65 = vector.extract_strided_slice %19 {offsets = [0, 2], sizes = [8, 1], strides = [1, 1]} : vector<8x9xf32> to vector<8x1xf32>
    %66 = vector.broadcast %64 : vector<1x256xf32> to vector<8x256xf32>
    %67 = vector.broadcast %65 : vector<8x1xf32> to vector<8x256xf32>
    %68 = arith.mulf %66, %67 : vector<8x256xf32>
    %69 = arith.mulf %55, %68 : vector<8x256xf32>
    %70 = arith.addf %54, %69 : vector<8x256xf32>
    %71 = vector.extract_strided_slice %21 {offsets = [0, 16], sizes = [8, 256], strides = [1, 1]} : vector<8x290xf32> to vector<8x256xf32>
    %c-1_i32_16 = arith.constant -1 : i32
    %72 = vector.broadcast %c-1_i32_16 : i32 to vector<1x256xi32>
    %73 = arith.addi %16, %72 : vector<1x256xi32>
    %c0_i32_17 = arith.constant 0 : i32
    %74 = vector.broadcast %c0_i32_17 : i32 to vector<1x256xi32>
    %75 = arith.cmpi sge, %73, %74 : vector<1x256xi32>
    %c16_i32_18 = arith.constant 16 : i32
    %76 = vector.broadcast %c16_i32_18 : i32 to vector<1x256xi32>
    %77 = arith.cmpi slt, %73, %76 : vector<1x256xi32>
    %78 = arith.andi %75, %77 : vector<1x256xi1>
    %79 = arith.extui %78 : vector<1x256xi1> to vector<1x256xi32>
    %80 = arith.sitofp %79 : vector<1x256xi32> to vector<1x256xf32>
    %81 = vector.extract_strided_slice %19 {offsets = [0, 3], sizes = [8, 1], strides = [1, 1]} : vector<8x9xf32> to vector<8x1xf32>
    %82 = vector.broadcast %80 : vector<1x256xf32> to vector<8x256xf32>
    %83 = vector.broadcast %81 : vector<8x1xf32> to vector<8x256xf32>
    %84 = arith.mulf %82, %83 : vector<8x256xf32>
    %85 = arith.mulf %71, %84 : vector<8x256xf32>
    %86 = arith.addf %70, %85 : vector<8x256xf32>
    %87 = vector.extract_strided_slice %21 {offsets = [0, 17], sizes = [8, 256], strides = [1, 1]} : vector<8x290xf32> to vector<8x256xf32>
    %c0_i32_19 = arith.constant 0 : i32
    %88 = vector.broadcast %c0_i32_19 : i32 to vector<1x256xi32>
    %89 = arith.addi %16, %88 : vector<1x256xi32>
    %c0_i32_20 = arith.constant 0 : i32
    %90 = vector.broadcast %c0_i32_20 : i32 to vector<1x256xi32>
    %91 = arith.cmpi sge, %89, %90 : vector<1x256xi32>
    %c16_i32_21 = arith.constant 16 : i32
    %92 = vector.broadcast %c16_i32_21 : i32 to vector<1x256xi32>
    %93 = arith.cmpi slt, %89, %92 : vector<1x256xi32>
    %94 = arith.andi %91, %93 : vector<1x256xi1>
    %95 = arith.extui %94 : vector<1x256xi1> to vector<1x256xi32>
    %96 = arith.sitofp %95 : vector<1x256xi32> to vector<1x256xf32>
    %97 = vector.extract_strided_slice %19 {offsets = [0, 4], sizes = [8, 1], strides = [1, 1]} : vector<8x9xf32> to vector<8x1xf32>
    %98 = vector.broadcast %96 : vector<1x256xf32> to vector<8x256xf32>
    %99 = vector.broadcast %97 : vector<8x1xf32> to vector<8x256xf32>
    %100 = arith.mulf %98, %99 : vector<8x256xf32>
    %101 = arith.mulf %87, %100 : vector<8x256xf32>
    %102 = arith.addf %86, %101 : vector<8x256xf32>
    %103 = vector.extract_strided_slice %21 {offsets = [0, 18], sizes = [8, 256], strides = [1, 1]} : vector<8x290xf32> to vector<8x256xf32>
    %c1_i32_22 = arith.constant 1 : i32
    %104 = vector.broadcast %c1_i32_22 : i32 to vector<1x256xi32>
    %105 = arith.addi %16, %104 : vector<1x256xi32>
    %c0_i32_23 = arith.constant 0 : i32
    %106 = vector.broadcast %c0_i32_23 : i32 to vector<1x256xi32>
    %107 = arith.cmpi sge, %105, %106 : vector<1x256xi32>
    %c16_i32_24 = arith.constant 16 : i32
    %108 = vector.broadcast %c16_i32_24 : i32 to vector<1x256xi32>
    %109 = arith.cmpi slt, %105, %108 : vector<1x256xi32>
    %110 = arith.andi %107, %109 : vector<1x256xi1>
    %111 = arith.extui %110 : vector<1x256xi1> to vector<1x256xi32>
    %112 = arith.sitofp %111 : vector<1x256xi32> to vector<1x256xf32>
    %113 = vector.extract_strided_slice %19 {offsets = [0, 5], sizes = [8, 1], strides = [1, 1]} : vector<8x9xf32> to vector<8x1xf32>
    %114 = vector.broadcast %112 : vector<1x256xf32> to vector<8x256xf32>
    %115 = vector.broadcast %113 : vector<8x1xf32> to vector<8x256xf32>
    %116 = arith.mulf %114, %115 : vector<8x256xf32>
    %117 = arith.mulf %103, %116 : vector<8x256xf32>
    %118 = arith.addf %102, %117 : vector<8x256xf32>
    %119 = vector.extract_strided_slice %21 {offsets = [0, 32], sizes = [8, 256], strides = [1, 1]} : vector<8x290xf32> to vector<8x256xf32>
    %c-1_i32_25 = arith.constant -1 : i32
    %120 = vector.broadcast %c-1_i32_25 : i32 to vector<1x256xi32>
    %121 = arith.addi %16, %120 : vector<1x256xi32>
    %c0_i32_26 = arith.constant 0 : i32
    %122 = vector.broadcast %c0_i32_26 : i32 to vector<1x256xi32>
    %123 = arith.cmpi sge, %121, %122 : vector<1x256xi32>
    %c16_i32_27 = arith.constant 16 : i32
    %124 = vector.broadcast %c16_i32_27 : i32 to vector<1x256xi32>
    %125 = arith.cmpi slt, %121, %124 : vector<1x256xi32>
    %126 = arith.andi %123, %125 : vector<1x256xi1>
    %127 = arith.extui %126 : vector<1x256xi1> to vector<1x256xi32>
    %128 = arith.sitofp %127 : vector<1x256xi32> to vector<1x256xf32>
    %129 = vector.extract_strided_slice %19 {offsets = [0, 6], sizes = [8, 1], strides = [1, 1]} : vector<8x9xf32> to vector<8x1xf32>
    %130 = vector.broadcast %128 : vector<1x256xf32> to vector<8x256xf32>
    %131 = vector.broadcast %129 : vector<8x1xf32> to vector<8x256xf32>
    %132 = arith.mulf %130, %131 : vector<8x256xf32>
    %133 = arith.mulf %119, %132 : vector<8x256xf32>
    %134 = arith.addf %118, %133 : vector<8x256xf32>
    %135 = vector.extract_strided_slice %21 {offsets = [0, 33], sizes = [8, 256], strides = [1, 1]} : vector<8x290xf32> to vector<8x256xf32>
    %c0_i32_28 = arith.constant 0 : i32
    %136 = vector.broadcast %c0_i32_28 : i32 to vector<1x256xi32>
    %137 = arith.addi %16, %136 : vector<1x256xi32>
    %c0_i32_29 = arith.constant 0 : i32
    %138 = vector.broadcast %c0_i32_29 : i32 to vector<1x256xi32>
    %139 = arith.cmpi sge, %137, %138 : vector<1x256xi32>
    %c16_i32_30 = arith.constant 16 : i32
    %140 = vector.broadcast %c16_i32_30 : i32 to vector<1x256xi32>
    %141 = arith.cmpi slt, %137, %140 : vector<1x256xi32>
    %142 = arith.andi %139, %141 : vector<1x256xi1>
    %143 = arith.extui %142 : vector<1x256xi1> to vector<1x256xi32>
    %144 = arith.sitofp %143 : vector<1x256xi32> to vector<1x256xf32>
    %145 = vector.extract_strided_slice %19 {offsets = [0, 7], sizes = [8, 1], strides = [1, 1]} : vector<8x9xf32> to vector<8x1xf32>
    %146 = vector.broadcast %144 : vector<1x256xf32> to vector<8x256xf32>
    %147 = vector.broadcast %145 : vector<8x1xf32> to vector<8x256xf32>
    %148 = arith.mulf %146, %147 : vector<8x256xf32>
    %149 = arith.mulf %135, %148 : vector<8x256xf32>
    %150 = arith.addf %134, %149 : vector<8x256xf32>
    %151 = vector.extract_strided_slice %21 {offsets = [0, 34], sizes = [8, 256], strides = [1, 1]} : vector<8x290xf32> to vector<8x256xf32>
    %c1_i32_31 = arith.constant 1 : i32
    %152 = vector.broadcast %c1_i32_31 : i32 to vector<1x256xi32>
    %153 = arith.addi %16, %152 : vector<1x256xi32>
    %c0_i32_32 = arith.constant 0 : i32
    %154 = vector.broadcast %c0_i32_32 : i32 to vector<1x256xi32>
    %155 = arith.cmpi sge, %153, %154 : vector<1x256xi32>
    %c16_i32_33 = arith.constant 16 : i32
    %156 = vector.broadcast %c16_i32_33 : i32 to vector<1x256xi32>
    %157 = arith.cmpi slt, %153, %156 : vector<1x256xi32>
    %158 = arith.andi %155, %157 : vector<1x256xi1>
    %159 = arith.extui %158 : vector<1x256xi1> to vector<1x256xi32>
    %160 = arith.sitofp %159 : vector<1x256xi32> to vector<1x256xf32>
    %161 = vector.extract_strided_slice %19 {offsets = [0, 8], sizes = [8, 1], strides = [1, 1]} : vector<8x9xf32> to vector<8x1xf32>
    %162 = vector.broadcast %160 : vector<1x256xf32> to vector<8x256xf32>
    %163 = vector.broadcast %161 : vector<8x1xf32> to vector<8x256xf32>
    %164 = arith.mulf %162, %163 : vector<8x256xf32>
    %165 = arith.mulf %151, %164 : vector<8x256xf32>
    %166 = arith.addf %150, %165 : vector<8x256xf32>
    %c0_34 = arith.constant 0 : index
    %c0_35 = arith.constant 0 : index
    %167 = vector.load %arg3[%c0_34, %c0_35] : memref<8x1xf32, #tpu.memory_space<vmem>>, vector<8x1xf32>
    %168 = vector.broadcast %167 : vector<8x1xf32> to vector<8x256xf32>
    %169 = arith.mulf %166, %168 : vector<8x256xf32>
    %c0_36 = arith.constant 0 : index
    %c0_37 = arith.constant 0 : index
    %170 = vector.load %arg4[%c0_36, %c0_37] : memref<8x1xf32, #tpu.memory_space<vmem>>, vector<8x1xf32>
    %171 = vector.broadcast %170 : vector<8x1xf32> to vector<8x256xf32>
    %172 = arith.addf %169, %171 : vector<8x256xf32>
    %c0_38 = arith.constant 0 : index
    %c0_39 = arith.constant 0 : index
    %173 = vector.load %arg5[%c0_38, %c0_39] : memref<16x8xf32, #tpu.memory_space<vmem>>, vector<16x8xf32>
    %cst_40 = arith.constant dense<0.000000e+00> : vector<16x256xf32>
    %174 = tpu.matmul %173, %172, %cst_40 {dimension_numbers = #tpu.dot_dimension_numbers<[1], [0], [0], [1], [0, 0, 1, 1], [], []>} : vector<16x8xf32>, vector<8x256xf32>, vector<16x256xf32> -> vector<16x256xf32>
    %c0_41 = arith.constant 0 : index
    %c0_42 = arith.constant 0 : index
    %175 = vector.load %arg6[%c0_41, %c0_42] : memref<16x1xf32, #tpu.memory_space<vmem>>, vector<16x1xf32>
    %176 = vector.broadcast %175 : vector<16x1xf32> to vector<16x256xf32>
    %177 = arith.mulf %174, %176 : vector<16x256xf32>
    %c0_43 = arith.constant 0 : index
    %c0_44 = arith.constant 0 : index
    %178 = vector.load %arg7[%c0_43, %c0_44] : memref<16x1xf32, #tpu.memory_space<vmem>>, vector<16x1xf32>
    %179 = vector.broadcast %178 : vector<16x1xf32> to vector<16x256xf32>
    %180 = arith.addf %177, %179 : vector<16x256xf32>
    %cst_45 = arith.constant 0.000000e+00 : f32
    %181 = vector.broadcast %cst_45 : f32 to vector<16x256xf32>
    %182 = arith.maximumf %180, %181 : vector<16x256xf32>
    %cst_46 = arith.constant 6.000000e+00 : f32
    %183 = vector.broadcast %cst_46 : f32 to vector<16x256xf32>
    %184 = arith.minimumf %182, %183 : vector<16x256xf32>
    %c0_47 = arith.constant 0 : index
    %c0_48 = arith.constant 0 : index
    %185 = vector.load %arg8[%c0_47, %c0_48] : memref<16x9xf32, #tpu.memory_space<vmem>>, vector<16x9xf32>
    %cst_49 = arith.constant 0.000000e+00 : f32
    %186 = vector.broadcast %cst_49 : f32 to vector<16x17xf32>
    %187 = tpu.concatenate %186, %184, %186 in 1 : vector<16x17xf32>, vector<16x256xf32>, vector<16x17xf32> -> vector<16x290xf32>
    %cst_50 = arith.constant 0.000000e+00 : f32
    %188 = vector.broadcast %cst_50 : f32 to vector<16x256xf32>
    %189 = vector.extract_strided_slice %187 {offsets = [0, 0], sizes = [16, 256], strides = [1, 1]} : vector<16x290xf32> to vector<16x256xf32>
    %c-1_i32_51 = arith.constant -1 : i32
    %190 = vector.broadcast %c-1_i32_51 : i32 to vector<1x256xi32>
    %191 = arith.addi %16, %190 : vector<1x256xi32>
    %c0_i32_52 = arith.constant 0 : i32
    %192 = vector.broadcast %c0_i32_52 : i32 to vector<1x256xi32>
    %193 = arith.cmpi sge, %191, %192 : vector<1x256xi32>
    %c16_i32_53 = arith.constant 16 : i32
    %194 = vector.broadcast %c16_i32_53 : i32 to vector<1x256xi32>
    %195 = arith.cmpi slt, %191, %194 : vector<1x256xi32>
    %196 = arith.andi %193, %195 : vector<1x256xi1>
    %197 = arith.extui %196 : vector<1x256xi1> to vector<1x256xi32>
    %198 = arith.sitofp %197 : vector<1x256xi32> to vector<1x256xf32>
    %199 = vector.extract_strided_slice %185 {offsets = [0, 0], sizes = [16, 1], strides = [1, 1]} : vector<16x9xf32> to vector<16x1xf32>
    %200 = vector.broadcast %198 : vector<1x256xf32> to vector<16x256xf32>
    %201 = vector.broadcast %199 : vector<16x1xf32> to vector<16x256xf32>
    %202 = arith.mulf %200, %201 : vector<16x256xf32>
    %203 = arith.mulf %189, %202 : vector<16x256xf32>
    %204 = arith.addf %188, %203 : vector<16x256xf32>
    %205 = vector.extract_strided_slice %187 {offsets = [0, 1], sizes = [16, 256], strides = [1, 1]} : vector<16x290xf32> to vector<16x256xf32>
    %c0_i32_54 = arith.constant 0 : i32
    %206 = vector.broadcast %c0_i32_54 : i32 to vector<1x256xi32>
    %207 = arith.addi %16, %206 : vector<1x256xi32>
    %c0_i32_55 = arith.constant 0 : i32
    %208 = vector.broadcast %c0_i32_55 : i32 to vector<1x256xi32>
    %209 = arith.cmpi sge, %207, %208 : vector<1x256xi32>
    %c16_i32_56 = arith.constant 16 : i32
    %210 = vector.broadcast %c16_i32_56 : i32 to vector<1x256xi32>
    %211 = arith.cmpi slt, %207, %210 : vector<1x256xi32>
    %212 = arith.andi %209, %211 : vector<1x256xi1>
    %213 = arith.extui %212 : vector<1x256xi1> to vector<1x256xi32>
    %214 = arith.sitofp %213 : vector<1x256xi32> to vector<1x256xf32>
    %215 = vector.extract_strided_slice %185 {offsets = [0, 1], sizes = [16, 1], strides = [1, 1]} : vector<16x9xf32> to vector<16x1xf32>
    %216 = vector.broadcast %214 : vector<1x256xf32> to vector<16x256xf32>
    %217 = vector.broadcast %215 : vector<16x1xf32> to vector<16x256xf32>
    %218 = arith.mulf %216, %217 : vector<16x256xf32>
    %219 = arith.mulf %205, %218 : vector<16x256xf32>
    %220 = arith.addf %204, %219 : vector<16x256xf32>
    %221 = vector.extract_strided_slice %187 {offsets = [0, 2], sizes = [16, 256], strides = [1, 1]} : vector<16x290xf32> to vector<16x256xf32>
    %c1_i32_57 = arith.constant 1 : i32
    %222 = vector.broadcast %c1_i32_57 : i32 to vector<1x256xi32>
    %223 = arith.addi %16, %222 : vector<1x256xi32>
    %c0_i32_58 = arith.constant 0 : i32
    %224 = vector.broadcast %c0_i32_58 : i32 to vector<1x256xi32>
    %225 = arith.cmpi sge, %223, %224 : vector<1x256xi32>
    %c16_i32_59 = arith.constant 16 : i32
    %226 = vector.broadcast %c16_i32_59 : i32 to vector<1x256xi32>
    %227 = arith.cmpi slt, %223, %226 : vector<1x256xi32>
    %228 = arith.andi %225, %227 : vector<1x256xi1>
    %229 = arith.extui %228 : vector<1x256xi1> to vector<1x256xi32>
    %230 = arith.sitofp %229 : vector<1x256xi32> to vector<1x256xf32>
    %231 = vector.extract_strided_slice %185 {offsets = [0, 2], sizes = [16, 1], strides = [1, 1]} : vector<16x9xf32> to vector<16x1xf32>
    %232 = vector.broadcast %230 : vector<1x256xf32> to vector<16x256xf32>
    %233 = vector.broadcast %231 : vector<16x1xf32> to vector<16x256xf32>
    %234 = arith.mulf %232, %233 : vector<16x256xf32>
    %235 = arith.mulf %221, %234 : vector<16x256xf32>
    %236 = arith.addf %220, %235 : vector<16x256xf32>
    %237 = vector.extract_strided_slice %187 {offsets = [0, 16], sizes = [16, 256], strides = [1, 1]} : vector<16x290xf32> to vector<16x256xf32>
    %c-1_i32_60 = arith.constant -1 : i32
    %238 = vector.broadcast %c-1_i32_60 : i32 to vector<1x256xi32>
    %239 = arith.addi %16, %238 : vector<1x256xi32>
    %c0_i32_61 = arith.constant 0 : i32
    %240 = vector.broadcast %c0_i32_61 : i32 to vector<1x256xi32>
    %241 = arith.cmpi sge, %239, %240 : vector<1x256xi32>
    %c16_i32_62 = arith.constant 16 : i32
    %242 = vector.broadcast %c16_i32_62 : i32 to vector<1x256xi32>
    %243 = arith.cmpi slt, %239, %242 : vector<1x256xi32>
    %244 = arith.andi %241, %243 : vector<1x256xi1>
    %245 = arith.extui %244 : vector<1x256xi1> to vector<1x256xi32>
    %246 = arith.sitofp %245 : vector<1x256xi32> to vector<1x256xf32>
    %247 = vector.extract_strided_slice %185 {offsets = [0, 3], sizes = [16, 1], strides = [1, 1]} : vector<16x9xf32> to vector<16x1xf32>
    %248 = vector.broadcast %246 : vector<1x256xf32> to vector<16x256xf32>
    %249 = vector.broadcast %247 : vector<16x1xf32> to vector<16x256xf32>
    %250 = arith.mulf %248, %249 : vector<16x256xf32>
    %251 = arith.mulf %237, %250 : vector<16x256xf32>
    %252 = arith.addf %236, %251 : vector<16x256xf32>
    %253 = vector.extract_strided_slice %187 {offsets = [0, 17], sizes = [16, 256], strides = [1, 1]} : vector<16x290xf32> to vector<16x256xf32>
    %c0_i32_63 = arith.constant 0 : i32
    %254 = vector.broadcast %c0_i32_63 : i32 to vector<1x256xi32>
    %255 = arith.addi %16, %254 : vector<1x256xi32>
    %c0_i32_64 = arith.constant 0 : i32
    %256 = vector.broadcast %c0_i32_64 : i32 to vector<1x256xi32>
    %257 = arith.cmpi sge, %255, %256 : vector<1x256xi32>
    %c16_i32_65 = arith.constant 16 : i32
    %258 = vector.broadcast %c16_i32_65 : i32 to vector<1x256xi32>
    %259 = arith.cmpi slt, %255, %258 : vector<1x256xi32>
    %260 = arith.andi %257, %259 : vector<1x256xi1>
    %261 = arith.extui %260 : vector<1x256xi1> to vector<1x256xi32>
    %262 = arith.sitofp %261 : vector<1x256xi32> to vector<1x256xf32>
    %263 = vector.extract_strided_slice %185 {offsets = [0, 4], sizes = [16, 1], strides = [1, 1]} : vector<16x9xf32> to vector<16x1xf32>
    %264 = vector.broadcast %262 : vector<1x256xf32> to vector<16x256xf32>
    %265 = vector.broadcast %263 : vector<16x1xf32> to vector<16x256xf32>
    %266 = arith.mulf %264, %265 : vector<16x256xf32>
    %267 = arith.mulf %253, %266 : vector<16x256xf32>
    %268 = arith.addf %252, %267 : vector<16x256xf32>
    %269 = vector.extract_strided_slice %187 {offsets = [0, 18], sizes = [16, 256], strides = [1, 1]} : vector<16x290xf32> to vector<16x256xf32>
    %c1_i32_66 = arith.constant 1 : i32
    %270 = vector.broadcast %c1_i32_66 : i32 to vector<1x256xi32>
    %271 = arith.addi %16, %270 : vector<1x256xi32>
    %c0_i32_67 = arith.constant 0 : i32
    %272 = vector.broadcast %c0_i32_67 : i32 to vector<1x256xi32>
    %273 = arith.cmpi sge, %271, %272 : vector<1x256xi32>
    %c16_i32_68 = arith.constant 16 : i32
    %274 = vector.broadcast %c16_i32_68 : i32 to vector<1x256xi32>
    %275 = arith.cmpi slt, %271, %274 : vector<1x256xi32>
    %276 = arith.andi %273, %275 : vector<1x256xi1>
    %277 = arith.extui %276 : vector<1x256xi1> to vector<1x256xi32>
    %278 = arith.sitofp %277 : vector<1x256xi32> to vector<1x256xf32>
    %279 = vector.extract_strided_slice %185 {offsets = [0, 5], sizes = [16, 1], strides = [1, 1]} : vector<16x9xf32> to vector<16x1xf32>
    %280 = vector.broadcast %278 : vector<1x256xf32> to vector<16x256xf32>
    %281 = vector.broadcast %279 : vector<16x1xf32> to vector<16x256xf32>
    %282 = arith.mulf %280, %281 : vector<16x256xf32>
    %283 = arith.mulf %269, %282 : vector<16x256xf32>
    %284 = arith.addf %268, %283 : vector<16x256xf32>
    %285 = vector.extract_strided_slice %187 {offsets = [0, 32], sizes = [16, 256], strides = [1, 1]} : vector<16x290xf32> to vector<16x256xf32>
    %c-1_i32_69 = arith.constant -1 : i32
    %286 = vector.broadcast %c-1_i32_69 : i32 to vector<1x256xi32>
    %287 = arith.addi %16, %286 : vector<1x256xi32>
    %c0_i32_70 = arith.constant 0 : i32
    %288 = vector.broadcast %c0_i32_70 : i32 to vector<1x256xi32>
    %289 = arith.cmpi sge, %287, %288 : vector<1x256xi32>
    %c16_i32_71 = arith.constant 16 : i32
    %290 = vector.broadcast %c16_i32_71 : i32 to vector<1x256xi32>
    %291 = arith.cmpi slt, %287, %290 : vector<1x256xi32>
    %292 = arith.andi %289, %291 : vector<1x256xi1>
    %293 = arith.extui %292 : vector<1x256xi1> to vector<1x256xi32>
    %294 = arith.sitofp %293 : vector<1x256xi32> to vector<1x256xf32>
    %295 = vector.extract_strided_slice %185 {offsets = [0, 6], sizes = [16, 1], strides = [1, 1]} : vector<16x9xf32> to vector<16x1xf32>
    %296 = vector.broadcast %294 : vector<1x256xf32> to vector<16x256xf32>
    %297 = vector.broadcast %295 : vector<16x1xf32> to vector<16x256xf32>
    %298 = arith.mulf %296, %297 : vector<16x256xf32>
    %299 = arith.mulf %285, %298 : vector<16x256xf32>
    %300 = arith.addf %284, %299 : vector<16x256xf32>
    %301 = vector.extract_strided_slice %187 {offsets = [0, 33], sizes = [16, 256], strides = [1, 1]} : vector<16x290xf32> to vector<16x256xf32>
    %c0_i32_72 = arith.constant 0 : i32
    %302 = vector.broadcast %c0_i32_72 : i32 to vector<1x256xi32>
    %303 = arith.addi %16, %302 : vector<1x256xi32>
    %c0_i32_73 = arith.constant 0 : i32
    %304 = vector.broadcast %c0_i32_73 : i32 to vector<1x256xi32>
    %305 = arith.cmpi sge, %303, %304 : vector<1x256xi32>
    %c16_i32_74 = arith.constant 16 : i32
    %306 = vector.broadcast %c16_i32_74 : i32 to vector<1x256xi32>
    %307 = arith.cmpi slt, %303, %306 : vector<1x256xi32>
    %308 = arith.andi %305, %307 : vector<1x256xi1>
    %309 = arith.extui %308 : vector<1x256xi1> to vector<1x256xi32>
    %310 = arith.sitofp %309 : vector<1x256xi32> to vector<1x256xf32>
    %311 = vector.extract_strided_slice %185 {offsets = [0, 7], sizes = [16, 1], strides = [1, 1]} : vector<16x9xf32> to vector<16x1xf32>
    %312 = vector.broadcast %310 : vector<1x256xf32> to vector<16x256xf32>
    %313 = vector.broadcast %311 : vector<16x1xf32> to vector<16x256xf32>
    %314 = arith.mulf %312, %313 : vector<16x256xf32>
    %315 = arith.mulf %301, %314 : vector<16x256xf32>
    %316 = arith.addf %300, %315 : vector<16x256xf32>
    %317 = vector.extract_strided_slice %187 {offsets = [0, 34], sizes = [16, 256], strides = [1, 1]} : vector<16x290xf32> to vector<16x256xf32>
    %c1_i32_75 = arith.constant 1 : i32
    %318 = vector.broadcast %c1_i32_75 : i32 to vector<1x256xi32>
    %319 = arith.addi %16, %318 : vector<1x256xi32>
    %c0_i32_76 = arith.constant 0 : i32
    %320 = vector.broadcast %c0_i32_76 : i32 to vector<1x256xi32>
    %321 = arith.cmpi sge, %319, %320 : vector<1x256xi32>
    %c16_i32_77 = arith.constant 16 : i32
    %322 = vector.broadcast %c16_i32_77 : i32 to vector<1x256xi32>
    %323 = arith.cmpi slt, %319, %322 : vector<1x256xi32>
    %324 = arith.andi %321, %323 : vector<1x256xi1>
    %325 = arith.extui %324 : vector<1x256xi1> to vector<1x256xi32>
    %326 = arith.sitofp %325 : vector<1x256xi32> to vector<1x256xf32>
    %327 = vector.extract_strided_slice %185 {offsets = [0, 8], sizes = [16, 1], strides = [1, 1]} : vector<16x9xf32> to vector<16x1xf32>
    %328 = vector.broadcast %326 : vector<1x256xf32> to vector<16x256xf32>
    %329 = vector.broadcast %327 : vector<16x1xf32> to vector<16x256xf32>
    %330 = arith.mulf %328, %329 : vector<16x256xf32>
    %331 = arith.mulf %317, %330 : vector<16x256xf32>
    %332 = arith.addf %316, %331 : vector<16x256xf32>
    %c0_78 = arith.constant 0 : index
    %c0_79 = arith.constant 0 : index
    %333 = vector.load %arg9[%c0_78, %c0_79] : memref<16x1xf32, #tpu.memory_space<vmem>>, vector<16x1xf32>
    %334 = vector.broadcast %333 : vector<16x1xf32> to vector<16x256xf32>
    %335 = arith.mulf %332, %334 : vector<16x256xf32>
    %c0_80 = arith.constant 0 : index
    %c0_81 = arith.constant 0 : index
    %336 = vector.load %arg10[%c0_80, %c0_81] : memref<16x1xf32, #tpu.memory_space<vmem>>, vector<16x1xf32>
    %337 = vector.broadcast %336 : vector<16x1xf32> to vector<16x256xf32>
    %338 = arith.addf %335, %337 : vector<16x256xf32>
    %cst_82 = arith.constant 0.000000e+00 : f32
    %339 = vector.broadcast %cst_82 : f32 to vector<16x256xf32>
    %340 = arith.maximumf %338, %339 : vector<16x256xf32>
    %cst_83 = arith.constant 6.000000e+00 : f32
    %341 = vector.broadcast %cst_83 : f32 to vector<16x256xf32>
    %342 = arith.minimumf %340, %341 : vector<16x256xf32>
    %c0_84 = arith.constant 0 : index
    %c0_85 = arith.constant 0 : index
    %343 = vector.load %arg11[%c0_84, %c0_85] : memref<16x16xf32, #tpu.memory_space<vmem>>, vector<16x16xf32>
    %cst_86 = arith.constant dense<0.000000e+00> : vector<16x256xf32>
    %344 = tpu.matmul %343, %342, %cst_86 {dimension_numbers = #tpu.dot_dimension_numbers<[1], [0], [0], [1], [0, 0, 1, 1], [], []>} : vector<16x16xf32>, vector<16x256xf32>, vector<16x256xf32> -> vector<16x256xf32>
    %c0_87 = arith.constant 0 : index
    %c0_88 = arith.constant 0 : index
    %345 = vector.load %arg12[%c0_87, %c0_88] : memref<16x1xf32, #tpu.memory_space<vmem>>, vector<16x1xf32>
    %346 = vector.broadcast %345 : vector<16x1xf32> to vector<16x256xf32>
    %347 = arith.mulf %344, %346 : vector<16x256xf32>
    %c0_89 = arith.constant 0 : index
    %c0_90 = arith.constant 0 : index
    %348 = vector.load %arg13[%c0_89, %c0_90] : memref<16x1xf32, #tpu.memory_space<vmem>>, vector<16x1xf32>
    %349 = vector.broadcast %348 : vector<16x1xf32> to vector<16x256xf32>
    %350 = arith.addf %347, %349 : vector<16x256xf32>
    %c0_91 = arith.constant 0 : index
    %c0_92 = arith.constant 0 : index
    %c0_93 = arith.constant 0 : index
    %351 = vector.load %arg14[%c0_91, %c0_92, %c0_93] : memref<1x16x256xf32, #tpu.memory_space<vmem>>, vector<1x16x256xf32>
    %352 = vector.shape_cast %351 : vector<1x16x256xf32> to vector<16x256xf32>
    %353 = vector.shape_cast %350 : vector<16x256xf32> to vector<1x16x256xf32>
    tpu.vector_store %arg14[%c0_91, %c0_92, %c0_93], %353 {strides = array<i32>} : memref<1x16x256xf32, #tpu.memory_space<vmem>>, vector<1x16x256xf32>,
    return
  }
  func.func @transform_0(%arg0: i32) -> (i32, i32, i32) {
    %c0_i32 = arith.constant 0 : i32
    %c0_i32_0 = arith.constant 0 : i32
    %c0_i32_1 = arith.constant 0 : i32
    return %arg0, %c0_i32, %c0_i32_0 : i32, i32, i32
  }
  func.func @transform_1(%arg0: i32) -> (i32, i32) {
    %c0_i32 = arith.constant 0 : i32
    %c0_i32_0 = arith.constant 0 : i32
    %c0_i32_1 = arith.constant 0 : i32
    return %c0_i32, %c0_i32_0 : i32, i32
  }
  func.func @transform_2(%arg0: i32) -> (i32, i32) {
    %c0_i32 = arith.constant 0 : i32
    %c0_i32_0 = arith.constant 0 : i32
    %c0_i32_1 = arith.constant 0 : i32
    return %c0_i32, %c0_i32_0 : i32, i32
  }
  func.func @transform_3(%arg0: i32) -> (i32, i32) {
    %c0_i32 = arith.constant 0 : i32
    %c0_i32_0 = arith.constant 0 : i32
    %c0_i32_1 = arith.constant 0 : i32
    return %c0_i32, %c0_i32_0 : i32, i32
  }
  func.func @transform_4(%arg0: i32) -> (i32, i32) {
    %c0_i32 = arith.constant 0 : i32
    %c0_i32_0 = arith.constant 0 : i32
    %c0_i32_1 = arith.constant 0 : i32
    return %c0_i32, %c0_i32_0 : i32, i32
  }
  func.func @transform_5(%arg0: i32) -> (i32, i32) {
    %c0_i32 = arith.constant 0 : i32
    %c0_i32_0 = arith.constant 0 : i32
    %c0_i32_1 = arith.constant 0 : i32
    return %c0_i32, %c0_i32_0 : i32, i32
  }
  func.func @transform_6(%arg0: i32) -> (i32, i32) {
    %c0_i32 = arith.constant 0 : i32
    %c0_i32_0 = arith.constant 0 : i32
    %c0_i32_1 = arith.constant 0 : i32
    return %c0_i32, %c0_i32_0 : i32, i32
  }
  func.func @transform_7(%arg0: i32) -> (i32, i32) {
    %c0_i32 = arith.constant 0 : i32
    %c0_i32_0 = arith.constant 0 : i32
    %c0_i32_1 = arith.constant 0 : i32
    return %c0_i32, %c0_i32_0 : i32, i32
  }
  func.func @transform_8(%arg0: i32) -> (i32, i32) {
    %c0_i32 = arith.constant 0 : i32
    %c0_i32_0 = arith.constant 0 : i32
    %c0_i32_1 = arith.constant 0 : i32
    return %c0_i32, %c0_i32_0 : i32, i32
  }
  func.func @transform_9(%arg0: i32) -> (i32, i32) {
    %c0_i32 = arith.constant 0 : i32
    %c0_i32_0 = arith.constant 0 : i32
    %c0_i32_1 = arith.constant 0 : i32
    return %c0_i32, %c0_i32_0 : i32, i32
  }
  func.func @transform_10(%arg0: i32) -> (i32, i32) {
    %c0_i32 = arith.constant 0 : i32
    %c0_i32_0 = arith.constant 0 : i32
    %c0_i32_1 = arith.constant 0 : i32
    return %c0_i32, %c0_i32_0 : i32, i32
  }
  func.func @transform_11(%arg0: i32) -> (i32, i32) {
    %c0_i32 = arith.constant 0 : i32
    %c0_i32_0 = arith.constant 0 : i32
    %c0_i32_1 = arith.constant 0 : i32
    return %c0_i32, %c0_i32_0 : i32, i32
  }
  func.func @transform_12(%arg0: i32) -> (i32, i32) {
    %c0_i32 = arith.constant 0 : i32
    %c0_i32_0 = arith.constant 0 : i32
    %c0_i32_1 = arith.constant 0 : i32
    return %c0_i32, %c0_i32_0 : i32, i32
  }
  func.func @transform_13(%arg0: i32) -> (i32, i32, i32) {
    %c0_i32 = arith.constant 0 : i32
    %c0_i32_0 = arith.constant 0 : i32
    %c0_i32_1 = arith.constant 0 : i32
    return %arg0, %c0_i32, %c0_i32_0 : i32, i32, i32
  }
}

</mosaic_0001>

<bundles_post_ra>
// kernel: a_call__.1
= control target key start
LH: loop header
LB: loop body
LE: loop exit
PB: predicated region body
PF: predicated region fallthrough
CT: control target
= control target key end

     0   :  { %s1955_s25 = smov 0   ;;  %s2596_s0 = inlined_call_operand.vmem [shape: f32[2,8,256], index: 0, kind: input, shape index: {}]   ;;  %s2597_s1 = inlined_call_operand.vmem [shape: f32[8,9], index: 1, kind: input, shape index: {}]   ;;  %s2598_s2 = inlined_call_operand.vmem [shape: f32[8,1], index: 2, kind: input, shape index: {}]   ;;  %s2599_s3 = inlined_call_operand.vmem [shape: f32[8,1], index: 3, kind: input, shape index: {}]   ;;  %s2600_s4 = inlined_call_operand.vmem [shape: f32[16,8], index: 4, kind: input, shape index: {}]   ;;  %s2601_s5 = inlined_call_operand.vmem [shape: f32[16,1], index: 5, kind: input, shape index: {}]   ;;  %s2602_s6 = inlined_call_operand.vmem [shape: f32[16,1], index: 6, kind: input, shape index: {}]   ;;  %s2603_s7 = inlined_call_operand.vmem [shape: f32[16,9], index: 7, kind: input, shape index: {}]   ;;  %s2604_s8 = inlined_call_operand.vmem [shape: f32[16,1], index: 8, kind: input, shape index: {}]   ;;  %s2605_s9 = inlined_call_operand.vmem [shape: f32[16,1], index: 9, kind: input, shape index: {}]   ;;  %s2606_s10 = inlined_call_operand.vmem [shape: f32[16,16], index: 10, kind: input, shape index: {}]   ;;  %s2607_s11 = inlined_call_operand.vmem [shape: f32[16,1], index: 11, kind: input, shape index: {}]   ;;  %s2608_s12 = inlined_call_operand.vmem [shape: f32[16,1], index: 12, kind: input, shape index: {}]   ;;  %s2609_s13 = inlined_call_operand.vmem [shape: f32[2,16,256], index: 13, kind: output, shape index: {}]  }
   0x1 LB: > { %s1766_s26 = sadd.s32 4294967295, %s1857_s25   ;;  %p1770_p0 = scmp.ge.s32.totalorder %s1857_s25, 1  ;;  %s1857_s25 = sphi %s1955_s25, %s23_s25  }
   0x2   : > { %p387_p1 = scmp.lt.s32.totalorder %s1857_s25, 3 }
   0x4   : > { %p388_p2 = pnand %p1770_p0, %p387_p1 }
   0x5   : > { %v1966_v0 = vld [vmem:[%s2597_s1] sm:$0xff] (!%p388_p2)  ;;  %p431_p3 = scmp.lt.s32.totalorder (!%p388_p2), %s1766_s26, 1  ;;  %v1859_v1 = vmov (!%p388_p2), 3   ;;  %v1860_v2 = vmov (!%p388_p2), 1   ;;  %v1861_v3 = vmov (!%p388_p2), 0.0   ;;  %v1862_v4 = vmov (!%p388_p2), 4  }
   0x6   : > { %391 = sbr.rel (%p388_p2) target bundleno = 1224 (0x4c8), region = 72  ;;  %1827 = vset.pattern.permute.xlu1 (!%p388_p2), %v1859_v1  ;;  %1825 = vset.pattern.permute.xlu0 (!%p388_p2), %v1860_v2  ;;  %v1863_v5 = vmov (!%p388_p2), 2   ;;  %v1864_v6 = vmov (!%p388_p2), 5   ;;  %v1865_v7 = vmov (!%p388_p2), 6   ;;  %v1866_v9 = vmov (!%p388_p2), 7   ;;  %s1867_s16 = smov (!%p388_p2), 17  }
   0x7   : > { %602 = vperm.xlu1 (!%p388_p2), %1827, %v1966_v0   ;;  %518 = vperm.xlu0 (!%p388_p2), %1825, %v1966_v0   ;;  %v1868_v10 = vmov (!%p388_p2), 8   ;;  %v1869_v12 = vmov (!%p388_p2), 0   ;;  %v441_v13 = vlaneseq (!%p388_p2)  ;;  %s1870_s17 = smov (!%p388_p2), 1   ;;  %s2626_s18 = smov (!%p388_p2), 33   ;;  %v816_v44 = vld [vmem:[%s2598_s2] sm:$0xff] (!%p388_p2)  ;;  %vm477_vm4 = vcmask (!%p388_p2), 138240  }
   0x8   : > { %905 = vmatprep.mubr.f32.mxu0 (!%p388_p2), %v1861_v3  ;;  %1662 = vmatprep.mubr.f32.mxu1 (!%p388_p2), %v1861_v3  ;;  %s1872_s19 = smov (!%p388_p2), 2   ;;  %s1873_s20 = smov (!%p388_p2), 16   ;;  %vm529_vm5 = vcmask (!%p388_p2), 7168   ;;  %vm756_vm6 = vcmask (!%p388_p2), 269312   ;;  %vm577_vm7 = vcmask (!%p388_p2), 15360   ;;  %vm613_vm8 = vcmask (!%p388_p2), 130048  }
   0x9   : > { %v442_v14 = vand.u32 (!%p388_p2), 127, %v441_v13  ;;  %s1874_s21 = smov (!%p388_p2), 18   ;;  %s1875_s22 = smov (!%p388_p2), 32   ;;  %vm720_vm9 = vcmask (!%p388_p2), 261120   ;;  %vm684_vm10 = vcmask (!%p388_p2), 146432   ;;  %vm792_vm11 = vcmask (!%p388_p2), 277504  }
   0xa   : > { %s2622_s23 = smov (!%p388_p2), 34   ;;  %s2612_s28 = smov (!%p388_p2), 127   ;;  %vm546_vm12 = vcmask (!%p388_p2), 1039360   ;;  %vm594_vm13 = vcmask (!%p388_p2), 1031168   ;;  %vm630_vm14 = vcmask (!%p388_p2), 916480   ;;  %vm665_vm15 = vcmask (!%p388_p2), 908288  }
   0xb   : > { %1828 = vset.pattern.permute.xlu1 (!%p388_p2), %v1862_v4  ;;  %1826 = vset.pattern.permute.xlu0 (!%p388_p2), %v1863_v5  ;;  %v443_v17 = vadd.s32 (!%p388_p2), 128, %v442_v14  ;;  %v448_v19 = vand.u32 (!%p388_p2), 15, %v442_v14  ;;  %s2624_s30 = smov (!%p388_p2), 95   ;;  %s2620_s14 = smov (!%p388_p2), 126  }
   0xc   : > { %638 = vperm.xlu1 (!%p388_p2), %1828, %v1966_v0   ;;  %566 = vperm.xlu0 (!%p388_p2), %1826, %v1966_v0   ;;  %s2616_s24 = smov (!%p388_p2), 110   ;;  %s2614_s27 = smov (!%p388_p2), 96  }
   0xd   : > { %s2643_s26 = smov (!%p431_p3, %s1766_s26), 1  ;;  %v455_v20 = vand.u32 15, %v443_v17  ;;  %v553_v21 = vadd.s32 1, %v448_v19  ;;  %v484_v24 = vadd.s32 4294967295, %v448_v19 }
   0xe   : > { %s1785_s29 = sshll.u32 %s2643_s26, 4 }
   0xf   : > { %s435_s15 = scalar_lea.vmem %s2596_s0, %s1785_s29  ;;  %v554_v22 = vadd.s32 1, %v455_v20  ;;  %v485_v25 = vadd.s32 4294967295, %v455_v20  ;;  %vm557_vm0 = vcmp.lt.s32.totalorder %v553_v21, 16  ;;  %vm486_vm2 = vcmp.ge.s32.totalorder %v484_v24, 0  ;;  %s2610_s29 = smov 111  }
  0x10   : > { %1829 = vset.pattern.permute.xlu1 %v1864_v6  ;;  %1830 = vset.pattern.permute.xlu0 %v1865_v7  ;;  %v468_v8 = vld [vmem:[%s435_s15] sm:$0xff]  ;;  %v469_v11 = vld [vmem:[%s435_s15 + $0x8] sm:$0xff]  ;;  %v2001_v27 = vsel %vm557_vm0, 1.0, %v1861_v3  ;;  %v2011_v32 = vsel %vm486_vm2, 1.0, %v1861_v3  ;;  %s2618_s15 = smov 112   ;;  %vm701_vm0 = vcmask 900096  }
  0x11   : > { %673 = vperm.xlu1 %1829, %v1966_v0   ;;  %709 = vperm.xlu0 %1830, %v1966_v0   ;;  %vm558_vm1 = vcmp.lt.s32.totalorder %v554_v22, 16  ;;  %vm487_vm3 = vcmp.ge.s32.totalorder %v485_v25, 0  ;;  %vm773_vm2 = vcmask 777216  }
  0x12   : > { %v2004_v28 = vsel %vm558_vm1, 1.0, %v1861_v3  ;;  %v2014_v33 = vsel %vm487_vm3, 1.0, %v1861_v3  ;;  %vm2628_vm1 = vcmask 785408   ;;  %vm809_vm3 = vcmask 769024  }
  0x15   : > { %1831 = vset.pattern.permute.xlu1 %v1866_v9  ;;  %473 = vrot.lane.b32.xlu0 %v468_v8, %s1867_s16 }
  0x16   : > { %745 = vperm.xlu1 %1831, %v1966_v0   ;;  %1833 = vset.pattern.permute.xlu0 %v1869_v12 }
  0x1a   : > { %1832 = vset.pattern.permute.xlu1 %v1868_v10 }
  0x1b   : > { %781 = vperm.xlu1 %1832, %v1966_v0  }
  0x1f   : > { %475 = vrot.lane.b32.xlu1 %v469_v11, %s1867_s16 }
  0x20   : > { %1834 = vset.pattern.permute.xlu1 %v1869_v12 }
  0x86   : > { %v603_v15 = vpop.permute.xlu1 %602  ;;  %v519_v16 = vpop.permute.xlu0 %518 }
  0x87   : > { %527 = vrot.lane.b32.xlu1 %v519_v16, %s1870_s17  ;;  %525 = vrot.lane.b32.xlu0 %v519_v16, %s1870_s17  ;;  %v605_v34 = vmul.f32 %v2011_v32, %v603_v15  ;;  %v606_v35 = vmul.f32 %v2014_v33, %v603_v15 }
  0x8b   : > { %v639_v18 = vpop.permute.xlu1 %638  ;;  %v567_v26 = vpop.permute.xlu0 %566 }
  0x8c   : > { %647 = vrot.lane.b32.xlu1 %v639_v18, %s1867_s16  ;;  %645 = vrot.lane.b32.xlu0 %v639_v18, %s1867_s16  ;;  %v569_v30 = vmul.f32 %v2001_v27, %v567_v26  ;;  %v570_v31 = vmul.f32 %v2004_v28, %v567_v26 }
  0x90   : > { %v674_v23 = vpop.permute.xlu1 %673  ;;  %v710_v36 = vpop.permute.xlu0 %709 }
  0x91   : > { %v676_v37 = vmul.f32 %v2001_v27, %v674_v23  ;;  %v677_v38 = vmul.f32 %v2004_v28, %v674_v23  ;;  %v712_v39 = vmul.f32 %v2011_v32, %v710_v36  ;;  %v713_v40 = vmul.f32 %v2014_v33, %v710_v36  ;;  %v824_v36 = vld [vmem:[%s2599_s3] sm:$0xff] }
  0x94   : > { %v474_v46 = vpop.permute.xlu0 %473 }
  0x95   : > { %v746_v29 = vpop.permute.xlu1 %745  ;;  %v2043_v48 = vsel %vm477_vm4, 0.0, %v474_v46 }
  0x96   : > { %754 = vrot.lane.b32.xlu1 %v746_v29, %s2626_s18  ;;  %752 = vrot.lane.b32.xlu0 %v746_v29, %s2626_s18 }
  0x9a   : > { %575 = vrot.lane.b32.xlu1 %v570_v31, %s1872_s19  ;;  %573 = vrot.lane.b32.xlu0 %v569_v30, %s1872_s19  ;;  %v782_v41 = vpop.permute.xlu1 %781 }
  0x9b   : > { %v784_v42 = vmul.f32 %v2001_v27, %v782_v41  ;;  %v785_v43 = vmul.f32 %v2004_v28, %v782_v41 }
  0x9e   : > { %611 = vrot.lane.b32.xlu1 %v606_v35, %s1873_s20  ;;  %609 = vrot.lane.b32.xlu0 %v605_v34, %s1873_s20  ;;  %v476_v45 = vpop.permute.xlu1 %475 }
  0x9f   : > { %v2040_v47 = vsel %vm477_vm4, %v476_v45, 0.0  ;;  %v2055_v58 = vsel %vm477_vm4, %v474_v46, %v476_v45 }
  0xa2   : > { %682 = vrot.lane.b32.xlu1 %v677_v38, %s1874_s21  ;;  %680 = vrot.lane.b32.xlu0 %v676_v37, %s1874_s21 }
  0xa6   : > { %718 = vrot.lane.b32.xlu1 %v713_v40, %s1875_s22  ;;  %716 = vrot.lane.b32.xlu0 %v712_v39, %s1875_s22 }
  0xaa   : > { %790 = vrot.lane.b32.xlu1 %v785_v43, %s2622_s23  ;;  %788 = vrot.lane.b32.xlu0 %v784_v42, %s2622_s23 }
  0xae   : > { %498 = vperm.xlu0 %1833, %v1966_v0   ;;  %819 = vperm.xlu1 %1834, %v816_v44  }
  0xb2   : > { %1835 = vset.pattern.permute.xlu0 %v1860_v2 }
  0xf9   : > { %v528_v49 = vpop.permute.xlu1 %527  ;;  %v526_v50 = vpop.permute.xlu0 %525 }
  0xfa   : > { %v536_v51 = vmul.f32 %v528_v49, %v2040_v47  ;;  %v534_v52 = vmul.f32 %v526_v50, %v2043_v48  ;;  %v530_v57 = vsel %vm529_vm5, %v526_v50, %v528_v49 }
  0xfb   : > { %v535_v59 = vmul.f32 %v530_v57, %v2055_v58 }
  0xfc   : > { %544 = vrot.lane.b32.xlu1 %v536_v51, %s2612_s28  ;;  %540 = vrot.lane.b32.xlu0 %v534_v52, %s2612_s28  ;;  %v919_v51 = vld [vmem:[%s2601_s5 + $0x8] sm:$0xff]  ;;  %v2113_v52 = vld [vmem:[%s2603_s7] sm:$0xff] }
  0xfe   : > { %v648_v53 = vpop.permute.xlu1 %647  ;;  %v646_v54 = vpop.permute.xlu0 %645 }
  0xff   : > { %v655_v55 = vmul.f32 %v648_v53, %v2040_v47  ;;  %v653_v56 = vmul.f32 %v646_v54, %v2043_v48  ;;  %v649_v60 = vsel %vm477_vm4, %v646_v54, %v648_v53  ;;  %v935_v53 = vld [vmem:[%s2602_s6 + $0x8] sm:$0xff] }
 0x100   : > { %v654_v61 = vmul.f32 %v649_v60, %v2055_v58 }
 0x101   : > { %663 = vrot.lane.b32.xlu0 %v655_v55, %s2610_s29  ;;  %659 = vrot.lane.b32.xlu1 %v653_v56, %s2610_s29 }
 0x105   : > { %542 = vrot.lane.b32.xlu1 %v535_v59, %s2612_s28  ;;  %s1884_s28 = smov 94  }
 0x108   : > { %v755_v62 = vpop.permute.xlu1 %754  ;;  %v753_v63 = vpop.permute.xlu0 %752 }
 0x109   : > { %v763_v0 = vmul.f32 %v755_v62, %v2040_v47  ;;  %v757_v8 = vsel %vm756_vm6, %v753_v63, %v755_v62  ;;  %661 = vrot.lane.b32.xlu1 %v654_v61, %s2610_s29  ;;  %v761_v46 = vmul.f32 %v753_v63, %v2043_v48  ;;  %s2634_s29 = smov 111  }
 0x10a   : > { %v762_v11 = vmul.f32 %v757_v8, %v2055_v58 }
 0x10b   : > { %771 = vrot.lane.b32.xlu0 %v763_v0, %s2624_s30 }
 0x10c   : > { %v576_v13 = vpop.permute.xlu1 %575  ;;  %v574_v14 = vpop.permute.xlu0 %573 }
 0x10d   : > { %v584_v15 = vmul.f32 %v576_v13, %v2040_v47  ;;  %769 = vrot.lane.b32.xlu1 %v762_v11, %s2624_s30  ;;  %v582_v16 = vmul.f32 %v574_v14, %v2043_v48  ;;  %v578_v25 = vsel %vm577_vm7, %v574_v14, %v576_v13 }
 0x10e   : > { %v583_v31 = vmul.f32 %v578_v25, %v2055_v58 }
 0x10f   : > { %592 = vrot.lane.b32.xlu0 %v584_v15, %s2620_s14 }
 0x110   : > { %v612_v17 = vpop.permute.xlu1 %611  ;;  %v610_v18 = vpop.permute.xlu0 %609 }
 0x111   : > { %v618_v19 = vmul.f32 %v610_v18, %v2043_v48  ;;  %588 = vrot.lane.b32.xlu1 %v582_v16, %s2620_s14  ;;  %v620_v20 = vmul.f32 %v612_v17, %v2040_v47  ;;  %v614_v35 = vsel %vm613_vm8, %v610_v18, %v612_v17 }
 0x112   : > { %v619_v40 = vmul.f32 %v614_v35, %v2055_v58 }
 0x113   : > { %624 = vrot.lane.b32.xlu0 %v618_v19, %s2618_s15 }
 0x114   : > { %v683_v21 = vpop.permute.xlu1 %682  ;;  %v681_v22 = vpop.permute.xlu0 %680 }
 0x115   : > { %v689_v23 = vmul.f32 %v681_v22, %v2043_v48  ;;  %628 = vrot.lane.b32.xlu1 %v620_v20, %s2618_s15  ;;  %v691_v24 = vmul.f32 %v683_v21, %v2040_v47  ;;  %v685_v41 = vsel %vm684_vm10, %v681_v22, %v683_v21 }
 0x116   : > { %v690_v44 = vmul.f32 %v685_v41, %v2055_v58 }
 0x117   : > { %695 = vrot.lane.b32.xlu0 %v689_v23, %s2616_s24 }
 0x118   : > { %v719_v26 = vpop.permute.xlu1 %718  ;;  %v717_v30 = vpop.permute.xlu0 %716 }
 0x119   : > { %v727_v29 = vmul.f32 %v719_v26, %v2040_v47  ;;  %699 = vrot.lane.b32.xlu1 %v691_v24, %s2616_s24  ;;  %v725_v34 = vmul.f32 %v717_v30, %v2043_v48  ;;  %v721_v37 = vsel %vm720_vm9, %v717_v30, %v719_v26 }
 0x11a   : > { %v726_v42 = vmul.f32 %v721_v37, %v2055_v58 }
 0x11b   : > { %735 = vrot.lane.b32.xlu0 %v727_v29, %s2614_s27 }
 0x11c   : > { %v791_v38 = vpop.permute.xlu1 %790  ;;  %v789_v39 = vpop.permute.xlu0 %788 }
 0x11d   : > { %590 = vrot.lane.b32.xlu1 %v583_v31, %s2620_s14  ;;  %v793_v43 = vsel %vm792_vm11, %v789_v39, %v791_v38  ;;  %v797_v49 = vmul.f32 %v789_v39, %v2043_v48  ;;  %v799_v50 = vmul.f32 %v791_v38, %v2040_v47  ;;  %v2122_v47 = vld [vmem:[%s2603_s7 + $0x8] sm:$0xff] }
 0x11e   : > { %v798_v45 = vmul.f32 %v793_v43, %v2055_v58 }
 0x11f   : > { %731 = vrot.lane.b32.xlu0 %v725_v34, %s2614_s27 }
 0x121   : > { %827 = vperm.xlu1 %1834, %v824_v36  }
 0x123   : > { %626 = vrot.lane.b32.xlu0 %v619_v40, %s2618_s15 }
 0x125   : > { %733 = vrot.lane.b32.xlu1 %v726_v42, %s2614_s27  ;;  %s2633_s27 = smov 112  }
 0x127   : > { %697 = vrot.lane.b32.xlu0 %v690_v44, %s2616_s24  ;;  %s2632_s24 = smov 126  }
 0x129   : > { %805 = vrot.lane.b32.xlu1 %v798_v45, %s1884_s28 }
 0x12b   : > { %767 = vrot.lane.b32.xlu0 %v761_v46, %s2624_s30 }
 0x12d   : > { %803 = vrot.lane.b32.xlu1 %v797_v49, %s1884_s28 }
 0x12f   : > { %807 = vrot.lane.b32.xlu0 %v799_v50, %s1884_s28 }
 0x131   : > { %927 = vperm.xlu1 %1834, %v919_v51  }
 0x133   : > { %1007 = vperm.xlu0 %1835, %v2113_v52  }
 0x135   : > { %943 = vperm.xlu1 %1834, %v935_v53  }
 0x137   : > { %1838 = vset.pattern.permute.xlu0 %v1863_v5 }
 0x138   : > { %1079 = vperm.xlu0 %1838, %v2122_v47  }
 0x139   : > { %1836 = vset.pattern.permute.xlu1 %v1860_v2  ;;  %v934_v2 = vld [vmem:[%s2602_s6] sm:$0xff] }
 0x13a   : > { %1011 = vperm.xlu1 %1836, %v2122_v47  }
 0x13c   : > { %1840 = vset.pattern.permute.xlu0 %v1862_v4 }
 0x13d   : > { %1211 = vperm.xlu0 %1840, %v2113_v52  }
 0x13e   : > { %1837 = vset.pattern.permute.xlu1 %v1863_v5 }
 0x13f   : > { %1075 = vperm.xlu1 %1837, %v2113_v52  }
 0x141   : > { %1843 = vset.pattern.permute.xlu0 %v1864_v6 }
 0x142   : > { %1283 = vperm.xlu0 %1843, %v2122_v47  }
 0x143   : > { %1839 = vset.pattern.permute.xlu1 %v1859_v1  ;;  %v918_v1 = vld [vmem:[%s2601_s5] sm:$0xff] }
 0x144   : > { %1143 = vperm.xlu1 %1839, %v2113_v52  }
 0x146   : > { %1845 = vset.pattern.permute.xlu0 %v1866_v9 }
 0x147   : > { %1415 = vperm.xlu0 %1845, %v2113_v52  }
 0x148   : > { %1147 = vperm.xlu1 %1839, %v2122_v47  }
 0x14b   : > { %1848 = vset.pattern.permute.xlu0 %v1868_v10 }
 0x14c   : > { %1841 = vset.pattern.permute.xlu1 %v1862_v4  ;;  %1487 = vperm.xlu0 %1848, %v2122_v47   ;;  %v2159_v4 = vpop.permute.xlu1 %819 }
 0x14d   : > { %1215 = vperm.xlu1 %1841, %v2122_v47  }
 0x150   : > { %1849 = vset.pattern.permute.xlu0 %v1869_v12 }
 0x151   : > { %1842 = vset.pattern.permute.xlu1 %v1864_v6  ;;  %922 = vperm.xlu0 %1849, %v918_v1   ;;  %v499_v6 = vpop.permute.xlu0 %498 }
 0x152   : > { %1279 = vperm.xlu1 %1842, %v2113_v52   ;;  %v502_v13 = vmul.f32 %v2014_v33, %v499_v6 }
 0x154   : > { %v504_v16 = vmul.f32 %v502_v13, %v2055_v58 }
 0x155   : > { %938 = vperm.xlu0 %1849, %v934_v2  }
 0x156   : > { %1844 = vset.pattern.permute.xlu1 %v1865_v7 }
 0x157   : > { %1347 = vperm.xlu1 %1844, %v2113_v52  }
 0x15b   : > { %1351 = vperm.xlu1 %1844, %v2122_v47  }
 0x15f   : > { %1846 = vset.pattern.permute.xlu1 %v1866_v9 }
 0x160   : > { %1419 = vperm.xlu1 %1846, %v2122_v47  }
 0x164   : > { %1847 = vset.pattern.permute.xlu1 %v1868_v10 }
 0x165   : > { %1483 = vperm.xlu1 %1847, %v2113_v52  }
 0x169   : > { %1850 = vset.pattern.permute.xlu1 %v1869_v12  ;;  %v501_v12 = vmul.f32 %v2011_v32, %v499_v6 }
 0x16b   : > { %v503_v20 = vmul.f32 %v501_v12, %v2043_v48 }
 0x16e   : > { %v545_v5 = vpop.permute.xlu1 %544  ;;  %v541_v54 = vpop.permute.xlu0 %540 }
 0x173   : > { %v660_v7 = vpop.permute.xlu1 %659  ;;  %v664_v56 = vpop.permute.xlu0 %663 }
 0x177   : > { %v543_v55 = vpop.permute.xlu1 %542 }
 0x178   : > { %v548_v15 = vsel %vm546_vm12, %v543_v55, %v545_v5  ;;  %v547_v18 = vsel %vm546_vm12, %v541_v54, %v543_v55 }
 0x179   : > { %v552_v21 = vadd.f32 %v548_v15, %v504_v16  ;;  %v551_v24 = vadd.f32 %v547_v18, %v503_v20 }
 0x17b   : > { %v662_v57 = vpop.permute.xlu1 %661 }
 0x17c   : > { %v667_v34 = vsel %vm665_vm15, %v662_v57, %v664_v56  ;;  %v666_v48 = vsel %vm665_vm15, %v660_v7, %v662_v57 }
 0x17d   : > { %v772_v59 = vpop.permute.xlu0 %771 }
 0x17f   : > { %v770_v60 = vpop.permute.xlu1 %769 }
 0x180   : > { %v775_v49 = vsel %vm773_vm2, %v770_v60, %v772_v59 }
 0x181   : > { %v593_v9 = vpop.permute.xlu0 %592 }
 0x183   : > { %v589_v61 = vpop.permute.xlu1 %588 }
 0x185   : > { %v625_v62 = vpop.permute.xlu0 %624 }
 0x187   : > { %v629_v63 = vpop.permute.xlu1 %628 }
 0x189   : > { %v696_v10 = vpop.permute.xlu0 %695 }
 0x18b   : > { %v700_v8 = vpop.permute.xlu1 %699 }
 0x18d   : > { %v736_v0 = vpop.permute.xlu0 %735 }
 0x18f   : > { %v591_v14 = vpop.permute.xlu1 %590 }
 0x190   : > { %v596_v19 = vsel %vm594_vm13, %v591_v14, %v593_v9  ;;  %v595_v22 = vsel %vm594_vm13, %v589_v61, %v591_v14 }
 0x191   : > { %v732_v11 = vpop.permute.xlu0 %731  ;;  %v600_v25 = vadd.f32 %v596_v19, %v552_v21  ;;  %v599_v29 = vadd.f32 %v595_v22, %v551_v24 }
 0x195   : > { %v627_v17 = vpop.permute.xlu0 %626 }
 0x196   : > { %v632_v23 = vsel %vm630_vm14, %v627_v17, %v629_v63  ;;  %v631_v26 = vsel %vm630_vm14, %v625_v62, %v627_v17  ;;  %v832_v63 = vld [vmem:[%s2600_s4] sm:$0xff] }
 0x197   : > { %v636_v58 = vadd.f32 %v632_v23, %v600_v25  ;;  %v635_v31 = vadd.f32 %v631_v26, %v599_v29 }
 0x199   : > { %v698_v30 = vpop.permute.xlu0 %697  ;;  %v671_v35 = vadd.f32 %v667_v34, %v636_v58  ;;  %v670_v38 = vadd.f32 %v666_v48, %v635_v31 }
 0x19a   : > { %v703_v37 = vsel %vm701_vm0, %v698_v30, %v700_v8  ;;  %v702_v40 = vsel %vm701_vm0, %v696_v10, %v698_v30 }
 0x19b   : > { %v707_v41 = vadd.f32 %v703_v37, %v671_v35  ;;  %v706_v45 = vadd.f32 %v702_v40, %v670_v38 }
 0x19d   : > { %v768_v39 = vpop.permute.xlu0 %767 }
 0x19e   : > { %v774_v6 = vsel %vm773_vm2, %v768_v39, %v770_v60 }
 0x1a0   : > { %v828_v36 = vpop.permute.xlu1 %827 }
 0x1a1   : > { %v808_v50 = vpop.permute.xlu0 %807 }
 0x1a4   : > { %v734_v42 = vpop.permute.xlu1 %733 }
 0x1a5   : > { %v738_v43 = vsel %vm2628_vm1, %v732_v11, %v734_v42  ;;  %v739_v44 = vsel %vm2628_vm1, %v734_v42, %v736_v0  ;;  %vm834_vm1 = vcmask 64512  }
 0x1a6   : > { %v743_v46 = vadd.f32 %v739_v44, %v707_v41  ;;  %v742_v51 = vadd.f32 %v738_v43, %v706_v45 }
 0x1a8   : > { %v806_v53 = vpop.permute.xlu1 %805  ;;  %v779_v1 = vadd.f32 %v775_v49, %v743_v46  ;;  %v778_v7 = vadd.f32 %v774_v6, %v742_v51  ;;  %v1551_v46 = vld [vmem:[%s2604_s8 + $0x8] sm:$0xff] }
 0x1a9   : > { %v811_v2 = vsel %vm809_vm3, %v806_v53, %v808_v50 }
 0x1aa   : > { %v815_v5 = vadd.f32 %v811_v2, %v779_v1 }
 0x1ac   : > { %v804_v54 = vpop.permute.xlu1 %803  ;;  %v823_v55 = vmul.f32 %v2159_v4, %v815_v5 }
 0x1ad   : > { %v810_v56 = vsel %vm809_vm3, %v804_v54, %v806_v53 }
 0x1ae   : > { %v814_v57 = vadd.f32 %v810_v56, %v778_v7  ;;  %v831_v9 = vadd.f32 %v828_v36, %v823_v55 }
 0x1b0   : > { %v2183_v61 = vpop.permute.xlu1 %927  ;;  %841 = vmatprep.subr.mxu0 %v831_v9  ;;  %v822_v59 = vmul.f32 %v2159_v4, %v814_v57  ;;  %v833_v4 = vld [vmem:[%s2600_s4 + $0x8] sm:$0xff] }
 0x1b2   : > { %v830_v62 = vadd.f32 %v828_v36, %v822_v59  ;;  %v1008_v60 = vpop.permute.xlu0 %1007 }
 0x1b3   : > { %1022 = vrot.lane.b32.xlu0 %v1008_v60, %s1870_s17  ;;  %1024 = vrot.lane.b32.xlu1 %v1008_v60, %s1870_s17 }
 0x1b4   : > { %842 = vmatpush1.msra.mxu0 %v830_v62  ;;  %v2191_v10 = vpop.permute.xlu1 %943 }
 0x1b5   : > { %1779 = vmatmul.mubr.msk.f32.vlgmr.msra.gmra.mrb[0].mxu0 %vm834_vm1, %v832_v63 }
 0x1b6   : > { %911 = vmatprep.mubr.f32.mxu0 %v1861_v3 }
 0x1b7   : > { %v1080_v11 = vpop.permute.xlu0 %1079 }
 0x1b8   : > { %v1084_v14 = vmul.f32 %v2001_v27, %v1080_v11  ;;  %v1085_v15 = vmul.f32 %v2004_v28, %v1080_v11 }
 0x1b9   : > { %1780 = vmatmul.mubr.msk.f32.gmra.mrb[2].mxu0 %vm834_vm1, %v833_v4  ;;  %v1012_v0 = vpop.permute.xlu1 %1011 }
 0x1ba   : > { %1026 = vrot.lane.b32.xlu0 %v1012_v0, %s1870_s17  ;;  %1028 = vrot.lane.b32.xlu1 %v1012_v0, %s1870_s17  ;;  %s2629_s17 = smov 33  }
 0x1bc   : > { %v1212_v23 = vpop.permute.xlu0 %1211 }
 0x1be   : > { %v1076_v8 = vpop.permute.xlu1 %1075 }
 0x1bf   : > { %v1082_v13 = vmul.f32 %v2001_v27, %v1076_v8  ;;  %v1083_v12 = vmul.f32 %v2004_v28, %v1076_v8 }
 0x1c1   : > { %1090 = vrot.lane.b32.xlu0 %v1082_v13, %s1872_s19  ;;  %1092 = vrot.lane.b32.xlu1 %v1083_v12, %s1872_s19  ;;  %v1284_v29 = vpop.permute.xlu0 %1283 }
 0x1c2   : > { %v1288_v30 = vmul.f32 %v2001_v27, %v1284_v29  ;;  %v1289_v31 = vmul.f32 %v2004_v28, %v1284_v29 }
 0x1c3   : > { %v1144_v16 = vpop.permute.xlu1 %1143 }
 0x1c4   : > { %v1150_v17 = vmul.f32 %v2011_v32, %v1144_v16  ;;  %v1151_v18 = vmul.f32 %v2014_v33, %v1144_v16 }
 0x1c5   : > { %1094 = vrot.lane.b32.xlu0 %v1084_v14, %s1872_s19  ;;  %1096 = vrot.lane.b32.xlu1 %v1085_v15, %s1872_s19  ;;  %s2630_s19 = smov 34  }
 0x1c6   : > { %v1416_v39 = vpop.permute.xlu0 %1415 }
 0x1c7   : > { %v1148_v19 = vpop.permute.xlu1 %1147 }
 0x1c8   : > { %v1152_v20 = vmul.f32 %v2011_v32, %v1148_v19  ;;  %v1153_v21 = vmul.f32 %v2014_v33, %v1148_v19 }
 0x1c9   : > { %1158 = vrot.lane.b32.xlu0 %v1150_v17, %s1873_s20  ;;  %1160 = vrot.lane.b32.xlu1 %v1151_v18, %s1873_s20 }
 0x1cb   : > { %v1488_v43 = vpop.permute.xlu0 %1487 }
 0x1cc   : > { %v1216_v22 = vpop.permute.xlu1 %1215  ;;  %v1492_v44 = vmul.f32 %v2001_v27, %v1488_v43  ;;  %v1493_v45 = vmul.f32 %v2004_v28, %v1488_v43 }
 0x1cd   : > { %1162 = vrot.lane.b32.xlu0 %v1152_v20, %s1873_s20  ;;  %1164 = vrot.lane.b32.xlu1 %v1153_v21, %s1873_s20  ;;  %s2637_s20 = smov 95  }
 0x1d1   : > { %1226 = vrot.lane.b32.xlu0 %v1212_v23, %s1867_s16  ;;  %1228 = vrot.lane.b32.xlu1 %v1212_v23, %s1867_s16  ;;  %v1280_v24 = vpop.permute.xlu1 %1279 }
 0x1d2   : > { %v1286_v25 = vmul.f32 %v2001_v27, %v1280_v24  ;;  %v1287_v26 = vmul.f32 %v2004_v28, %v1280_v24 }
 0x1d5   : > { %1230 = vrot.lane.b32.xlu0 %v1216_v22, %s1867_s16  ;;  %1232 = vrot.lane.b32.xlu1 %v1216_v22, %s1867_s16 }
 0x1d6   : > { %v1348_v58 = vpop.permute.xlu1 %1347 }
 0x1d7   : > { %v1354_v34 = vmul.f32 %v2011_v32, %v1348_v58  ;;  %v1355_v35 = vmul.f32 %v2014_v33, %v1348_v58 }
 0x1d9   : > { %1294 = vrot.lane.b32.xlu0 %v1286_v25, %s1874_s21  ;;  %1296 = vrot.lane.b32.xlu1 %v1287_v26, %s1874_s21 }
 0x1da   : > { %v1352_v36 = vpop.permute.xlu1 %1351 }
 0x1db   : > { %v1356_v48 = vmul.f32 %v2011_v32, %v1352_v36  ;;  %v1357_v37 = vmul.f32 %v2014_v33, %v1352_v36 }
 0x1dd   : > { %1298 = vrot.lane.b32.xlu0 %v1288_v30, %s1874_s21  ;;  %1300 = vrot.lane.b32.xlu1 %v1289_v31, %s1874_s21 }
 0x1df   : > { %v1420_v38 = vpop.permute.xlu1 %1419 }
 0x1e1   : > { %1362 = vrot.lane.b32.xlu0 %v1354_v34, %s1875_s22  ;;  %1364 = vrot.lane.b32.xlu1 %v1355_v35, %s1875_s22 }
 0x1e4   : > { %v1484_v40 = vpop.permute.xlu1 %1483 }
 0x1e5   : > { %1366 = vrot.lane.b32.xlu0 %v1356_v48, %s1875_s22  ;;  %1368 = vrot.lane.b32.xlu1 %v1357_v37, %s1875_s22  ;;  %v1490_v41 = vmul.f32 %v2001_v27, %v1484_v40  ;;  %v1491_v42 = vmul.f32 %v2004_v28, %v1484_v40  ;;  %v1550_v27 = vld [vmem:[%s2604_s8] sm:$0xff]  ;;  %v1567_v28 = vld [vmem:[%s2605_s9 + $0x8] sm:$0xff] }
 0x1e9   : > { %1430 = vrot.lane.b32.xlu0 %v1416_v39, %s2629_s17  ;;  %1432 = vrot.lane.b32.xlu1 %v1416_v39, %s2629_s17 }
 0x1ed   : > { %1434 = vrot.lane.b32.xlu0 %v1420_v38, %s2629_s17  ;;  %1436 = vrot.lane.b32.xlu1 %v1420_v38, %s2629_s17  ;;  %s2635_s17 = smov 110  }
 0x1f1   : > { %1498 = vrot.lane.b32.xlu0 %v1490_v41, %s2630_s19  ;;  %1500 = vrot.lane.b32.xlu1 %v1491_v42, %s2630_s19 }
 0x1f5   : > { %1502 = vrot.lane.b32.xlu0 %v1492_v44, %s2630_s19  ;;  %1504 = vrot.lane.b32.xlu1 %v1493_v45, %s2630_s19  ;;  %s2636_s19 = smov 96  }
 0x1f9   : > { %986 = vperm.xlu0 %1849, %v2113_v52   ;;  %991 = vperm.xlu1 %1850, %v2122_v47   ;;  %v1566_v52 = vld [vmem:[%s2605_s9] sm:$0xff]  ;;  %v923_v47 = vpop.permute.xlu0 %922 }
 0x1fd   : > { %1559 = vperm.xlu0 %1849, %v1551_v46   ;;  %1554 = vperm.xlu1 %1850, %v1550_v27   ;;  %v939_v53 = vpop.permute.xlu0 %938 }
 0x201   : > { %1575 = vperm.xlu0 %1849, %v1567_v28   ;;  %1570 = vperm.xlu1 %1850, %v1566_v52  }
 0x225   : > { %v2268_v11 = vpop.permute.xlu1 %1024  ;;  %v2273_v13 = vpop.permute.xlu0 %1022 }
 0x22c   : > { %v2277_v12 = vpop.permute.xlu0 %1026 }
 0x233   : > { %v2281_v15 = vpop.permute.xlu0 %1090 }
 0x237   : > { %v2285_v17 = vpop.permute.xlu0 %1094 }
 0x23b   : > { %v2289_v19 = vpop.permute.xlu0 %1158 }
 0x23f   : > { %v2293_v21 = vpop.permute.xlu0 %1162 }
 0x243   : > { %v2297_v23 = vpop.permute.xlu0 %1226 }
 0x247   : > { %v2301_v25 = vpop.permute.xlu0 %1230 }
 0x24b   : > { %v2305_v29 = vpop.permute.xlu0 %1294 }
 0x24f   : > { %v2309_v30 = vpop.permute.xlu0 %1298 }
 0x253   : > { %v2313_v34 = vpop.permute.xlu0 %1362 }
 0x257   : > { %v2317_v36 = vpop.permute.xlu0 %1366 }
 0x25b   : > { %v2321_v37 = vpop.permute.xlu0 %1430 }
 0x25f   : > { %v2325_v39 = vpop.permute.xlu0 %1434 }
 0x263   : > { %v2329_v41 = vpop.permute.xlu0 %1498 }
 0x267   : > { %v2331_v43 = vpop.permute.xlu0 %1502 }
 0x278   : > { %v987_v45 = vpop.permute.xlu0 %986 }
 0x27c   : > { %v2337_v28 = vpop.permute.xlu0 %1559 }
 0x288   : > { %v907_v49 = vpop.f32.mrb[0].mxu0 }
 0x289   : > { %v930_v50 = vmul.f32 %v923_v47, %v907_v49  ;;  %v909_v51 = vpop.f32.mrb[1].mxu0 }
 0x28a   : > { %v931_v1 = vmul.f32 %v923_v47, %v909_v51  ;;  %v994_v47 = vmul.f32 %v2011_v32, %v987_v45 }
 0x28b   : > { %v946_v2 = vadd.f32 %v939_v53, %v930_v50 }
 0x28c   : > { %v947_v5 = vadd.f32 %v939_v53, %v931_v1  ;;  %v913_v6 = vpop.f32.mrb[2].mxu0 }
 0x28d   : > { %v950_v54 = vmax.f32 %v946_v2, 0.0  ;;  %v932_v7 = vmul.f32 %v2183_v61, %v913_v6  ;;  %v915_v55 = vpop.f32.mrb[3].mxu0 }
 0x28e   : > { %v933_v56 = vmul.f32 %v2183_v61, %v915_v55  ;;  %v951_v9 = vmax.f32 %v947_v5, 0.0  ;;  %v2271_v61 = vpop.permute.xlu1 %1028  ;;  %v2353_v5 = vpop.permute.xlu0 %1575 }
 0x28f   : > { %v954_v57 = vmin.f32 %v950_v54, 6.0  ;;  %v948_v59 = vadd.f32 %v2191_v10, %v932_v7 }
 0x290   : > { %v949_v62 = vadd.f32 %v2191_v10, %v933_v56  ;;  %v955_v60 = vmin.f32 %v951_v9, 6.0 }
 0x291   : > { %v952_v63 = vmax.f32 %v948_v59, 0.0  ;;  %964 = vrot.lane.b32.xlu1 %v954_v57, %s1867_s16 }
 0x292   : > { %v953_v0 = vmax.f32 %v949_v62, 0.0  ;;  %v2275_v10 = vpop.permute.xlu1 %1092 }
 0x293   : > { %v956_v4 = vmin.f32 %v952_v63, 6.0  ;;  %v995_v63 = vmul.f32 %v2014_v33, %v987_v45 }
 0x294   : > { %v957_v8 = vmin.f32 %v953_v0, 6.0 }
 0x295   : > { %968 = vrot.lane.b32.xlu0 %v956_v4, %s1867_s16  ;;  %966 = vrot.lane.b32.xlu1 %v955_v60, %s1867_s16 }
 0x296   : > { %v2279_v14 = vpop.permute.xlu1 %1096 }
 0x299   : > { %970 = vrot.lane.b32.xlu1 %v957_v8, %s1867_s16  ;;  %s2631_s16 = smov 127  }
 0x29a   : > { %v2283_v16 = vpop.permute.xlu1 %1160 }
 0x29e   : > { %v2287_v18 = vpop.permute.xlu1 %1164 }
 0x2a2   : > { %v2291_v20 = vpop.permute.xlu1 %1228 }
 0x2a6   : > { %v2295_v22 = vpop.permute.xlu1 %1232 }
 0x2aa   : > { %v2299_v24 = vpop.permute.xlu1 %1296 }
 0x2ae   : > { %v2303_v26 = vpop.permute.xlu1 %1300 }
 0x2b2   : > { %v2307_v58 = vpop.permute.xlu1 %1364 }
 0x2b6   : > { %v2311_v31 = vpop.permute.xlu1 %1368 }
 0x2ba   : > { %v2315_v35 = vpop.permute.xlu1 %1432 }
 0x2be   : > { %v2319_v48 = vpop.permute.xlu1 %1436 }
 0x2c2   : > { %v2323_v38 = vpop.permute.xlu1 %1500 }
 0x2c6   : > { %v2327_v40 = vpop.permute.xlu1 %1504 }
 0x2ca   : > { %v992_v42 = vpop.permute.xlu1 %991 }
 0x2cb   : > { %v996_v60 = vmul.f32 %v2011_v32, %v992_v42  ;;  %v997_v4 = vmul.f32 %v2014_v33, %v992_v42 }
 0x2ce   : > { %v2333_v44 = vpop.permute.xlu1 %1554 }
 0x2d2   : > { %v2335_v46 = vpop.permute.xlu1 %1570 }
 0x303   : > { %v965_v27 = vpop.permute.xlu1 %964 }
 0x304   : > { %v2340_v52 = vsel %vm477_vm4, 0.0, %v965_v27 }
 0x305   : > { %v1038_v49 = vmul.f32 %v2273_v13, %v2340_v52  ;;  %v2347_v51 = vmul.f32 %v994_v47, %v2340_v52  ;;  %v1106_v2 = vmul.f32 %v2281_v15, %v2340_v52  ;;  %v1174_v54 = vmul.f32 %v2289_v19, %v2340_v52 }
 0x306   : > { %v1242_v56 = vmul.f32 %v2297_v23, %v2340_v52  ;;  %v1310_v45 = vmul.f32 %v2305_v29, %v2340_v52  ;;  %v1378_v33 = vmul.f32 %v2313_v34, %v2340_v52 }
 0x307   : > { %v967_v50 = vpop.permute.xlu1 %966  ;;  %1050 = vrot.lane.b32.xlu1 %v1038_v49, %s2631_s16  ;;  %v969_v7 = vpop.permute.xlu0 %968  ;;  %v1446_v49 = vmul.f32 %v2321_v37, %v2340_v52 }
 0x308   : > { %v982_v53 = vsel %vm477_vm4, %v967_v50, 0.0  ;;  %v972_v57 = vsel %vm477_vm4, %v965_v27, %v967_v50  ;;  %v2368_v9 = vsel %vm477_vm4, 0.0, %v969_v7  ;;  %v1030_v50 = vsel %vm529_vm5, %v2273_v13, %v2268_v11 }
 0x309   : > { %v1040_v1 = vmul.f32 %v2268_v11, %v982_v53  ;;  %v1108_v6 = vmul.f32 %v2275_v10, %v982_v53  ;;  %v1176_v62 = vmul.f32 %v2283_v16, %v982_v53  ;;  %v2380_v0 = vmul.f32 %v995_v63, %v972_v57 }
 0x30a   : > { %v2383_v8 = vmul.f32 %v996_v60, %v2368_v9  ;;  %v1244_v47 = vmul.f32 %v2291_v20, %v982_v53  ;;  %v1312_v32 = vmul.f32 %v2299_v24, %v982_v53  ;;  %v1380_v42 = vmul.f32 %v2307_v58, %v982_v53 }
 0x30b   : > { %1054 = vrot.lane.b32.xlu0 %v1040_v1, %s2631_s16  ;;  %1118 = vrot.lane.b32.xlu1 %v1106_v2, %s2632_s24  ;;  %v2360_v55 = vpop.permute.xlu1 %970  ;;  %v1448_v1 = vmul.f32 %v2315_v35, %v982_v53  ;;  %v1039_v2 = vmul.f32 %v1030_v50, %v972_v57  ;;  %v1166_v11 = vsel %vm613_vm8, %v2289_v19, %v2283_v16 }
 0x30c   : > { %v2372_v59 = vsel %vm477_vm4, %v969_v7, %v2360_v55  ;;  %v1175_v13 = vmul.f32 %v1166_v11, %v972_v57  ;;  %v1302_v16 = vsel %vm684_vm10, %v2305_v29, %v2299_v24  ;;  %v1245_v63 = vmul.f32 %v2301_v25, %v2368_v9 }
 0x30d   : > { %v2386_v27 = vmul.f32 %v997_v4, %v2372_v59  ;;  %v1311_v19 = vmul.f32 %v1302_v16, %v972_v57  ;;  %v1438_v24 = vsel %vm756_vm6, %v2321_v37, %v2315_v35  ;;  %v1313_v60 = vmul.f32 %v2309_v30, %v2368_v9 }
 0x30e   : > { %v1447_v29 = vmul.f32 %v1438_v24, %v972_v57  ;;  %v1381_v4 = vmul.f32 %v2317_v36, %v2368_v9  ;;  %v1031_v35 = vsel %vm529_vm5, %v2277_v12, %v2271_v61  ;;  %v1449_v37 = vmul.f32 %v2325_v39, %v2368_v9 }
 0x30f   : > { %1122 = vrot.lane.b32.xlu0 %v1108_v6, %s2632_s24  ;;  %1186 = vrot.lane.b32.xlu1 %v1174_v54, %s2633_s27  ;;  %v1098_v6 = vsel %vm577_vm7, %v2281_v15, %v2275_v10  ;;  %v1516_v54 = vmul.f32 %v2323_v38, %v982_v53  ;;  %v1234_v10 = vsel %vm477_vm4, %v2297_v23, %v2291_v20 }
 0x310   : > { %v1107_v7 = vmul.f32 %v1098_v6, %v972_v57  ;;  %v1243_v15 = vmul.f32 %v1234_v10, %v972_v57  ;;  %v1109_v53 = vmul.f32 %v2285_v17, %v2368_v9  ;;  %v1370_v20 = vsel %vm720_vm9, %v2313_v34, %v2307_v58  ;;  %v1675_v6 = vld [vmem:[%s2607_s11] sm:$0xff] }
 0x311   : > { %v1379_v23 = vmul.f32 %v1370_v20, %v972_v57  ;;  %v1506_v58 = vsel %vm792_vm11, %v2329_v41, %v2323_v38  ;;  %v983_v38 = vsel %vm477_vm4, %v2360_v55, 0.0  ;;  %v1167_v55 = vsel %vm613_vm8, %v2293_v21, %v2287_v18 }
 0x312   : > { %v1515_v34 = vmul.f32 %v1506_v58, %v972_v57  ;;  %v1099_v57 = vsel %vm577_vm7, %v2285_v17, %v2279_v14  ;;  %v1179_v17 = vmul.f32 %v2287_v18, %v983_v38  ;;  %v1371_v18 = vsel %vm720_vm9, %v2317_v36, %v2311_v31 }
 0x313   : > { %1190 = vrot.lane.b32.xlu0 %v1176_v62, %s2633_s27  ;;  %1254 = vrot.lane.b32.xlu1 %v1242_v56, %s2634_s29  ;;  %v1041_v56 = vmul.f32 %v2277_v12, %v2368_v9  ;;  %v1177_v62 = vmul.f32 %v2293_v21, %v2368_v9  ;;  %v1110_v12 = vmul.f32 %v1099_v57, %v2372_v59 }
 0x314   : > { %v1247_v21 = vmul.f32 %v2295_v22, %v983_v38  ;;  %v1382_v50 = vmul.f32 %v1371_v18, %v2372_v59  ;;  %v1451_v36 = vmul.f32 %v2319_v48, %v983_v38 }
 0x317   : > { %1258 = vrot.lane.b32.xlu0 %v1244_v47, %s2634_s29  ;;  %1322 = vrot.lane.b32.xlu1 %v1310_v45, %s2635_s17  ;;  %v1042_v47 = vmul.f32 %v1031_v35, %v2372_v59  ;;  %v1043_v45 = vmul.f32 %v2271_v61, %v983_v38  ;;  %v1235_v61 = vsel %vm477_vm4, %v2301_v25, %v2295_v22  ;;  %vm2638_vm4 = vcmask 785408  }
 0x318   : > { %v1315_v25 = vmul.f32 %v2303_v26, %v983_v38  ;;  %v1439_v22 = vsel %vm756_vm6, %v2325_v39, %v2319_v48  ;;  %v1514_v39 = vmul.f32 %v2329_v41, %v2340_v52  ;;  %v1517_v48 = vmul.f32 %v2331_v43, %v2368_v9  ;;  %v1691_v41 = vld [vmem:[%s2608_s12] sm:$0xff]  ;;  %v1692_v52 = vld [vmem:[%s2608_s12 + $0x8] sm:$0xff]  ;;  %vm2639_vm5 = vmmov %vm2638_vm4 }
 0x319   : > { %vm2640_vm6 = vmmov %vm2638_vm4 }
 0x31a   : > { %vm2641_vm7 = vmmov %vm2638_vm4 }
 0x31b   : > { %1326 = vrot.lane.b32.xlu0 %v1312_v32, %s2635_s17  ;;  %1390 = vrot.lane.b32.xlu1 %v1378_v33, %s2636_s19  ;;  %v1111_v32 = vmul.f32 %v2279_v14, %v983_v38  ;;  %v1178_v33 = vmul.f32 %v1167_v55, %v2372_v59  ;;  %v1303_v14 = vsel %vm684_vm10, %v2309_v30, %v2303_v26 }
 0x31c   : > { %v1383_v30 = vmul.f32 %v2311_v31, %v983_v38  ;;  %v1507_v26 = vsel %vm792_vm11, %v2331_v43, %v2327_v40  ;;  %v1519_v31 = vmul.f32 %v2327_v40, %v983_v38  ;;  %v1676_v40 = vld [vmem:[%s2607_s11 + $0x8] sm:$0xff] }
 0x31f   : > { %1394 = vrot.lane.b32.xlu0 %v1380_v42, %s2636_s19  ;;  %1458 = vrot.lane.b32.xlu1 %v1446_v49, %s2637_s20  ;;  %v1246_v42 = vmul.f32 %v1235_v61, %v2372_v59  ;;  %v1314_v49 = vmul.f32 %v1303_v14, %v2372_v59 }
 0x323   : > { %1462 = vrot.lane.b32.xlu0 %v1448_v1, %s2637_s20  ;;  %1052 = vrot.lane.b32.xlu1 %v1039_v2, %s2631_s16  ;;  %v1450_v1 = vmul.f32 %v1439_v22, %v2372_v59  ;;  %v1518_v2 = vmul.f32 %v1507_v26, %v2372_v59 }
 0x327   : > { %1530 = vrot.lane.b32.xlu0 %v1516_v54, %s1884_s28  ;;  %1120 = vrot.lane.b32.xlu1 %v1107_v7, %s2632_s24 }
 0x32b   : > { %1188 = vrot.lane.b32.xlu1 %v1175_v13, %s2633_s27  ;;  %1056 = vrot.lane.b32.xlu0 %v1041_v56, %s2631_s16 }
 0x32f   : > { %1256 = vrot.lane.b32.xlu1 %v1243_v15, %s2634_s29  ;;  %1124 = vrot.lane.b32.xlu0 %v1109_v53, %s2632_s24 }
 0x333   : > { %1324 = vrot.lane.b32.xlu1 %v1311_v19, %s2635_s17  ;;  %1192 = vrot.lane.b32.xlu0 %v1177_v62, %s2633_s27 }
 0x337   : > { %1392 = vrot.lane.b32.xlu1 %v1379_v23, %s2636_s19  ;;  %1260 = vrot.lane.b32.xlu0 %v1245_v63, %s2634_s29 }
 0x33b   : > { %1460 = vrot.lane.b32.xlu1 %v1447_v29, %s2637_s20  ;;  %1328 = vrot.lane.b32.xlu0 %v1313_v60, %s2635_s17 }
 0x33f   : > { %1528 = vrot.lane.b32.xlu1 %v1515_v34, %s1884_s28  ;;  %1396 = vrot.lane.b32.xlu0 %v1381_v4, %s2636_s19 }
 0x343   : > { %1464 = vrot.lane.b32.xlu0 %v1449_v37, %s2637_s20  ;;  %1058 = vrot.lane.b32.xlu1 %v1042_v47, %s2631_s16 }
 0x347   : > { %1060 = vrot.lane.b32.xlu0 %v1043_v45, %s2631_s16  ;;  %1126 = vrot.lane.b32.xlu1 %v1110_v12, %s2632_s24 }
 0x34b   : > { %1128 = vrot.lane.b32.xlu0 %v1111_v32, %s2632_s24  ;;  %1194 = vrot.lane.b32.xlu1 %v1178_v33, %s2633_s27 }
 0x34f   : > { %1196 = vrot.lane.b32.xlu0 %v1179_v17, %s2633_s27  ;;  %1262 = vrot.lane.b32.xlu1 %v1246_v42, %s2634_s29 }
 0x353   : > { %1264 = vrot.lane.b32.xlu0 %v1247_v21, %s2634_s29  ;;  %1330 = vrot.lane.b32.xlu1 %v1314_v49, %s2635_s17 }
 0x357   : > { %1332 = vrot.lane.b32.xlu0 %v1315_v25, %s2635_s17  ;;  %1398 = vrot.lane.b32.xlu1 %v1382_v50, %s2636_s19  ;;  %s1786_s17 = sshll.u32 %s2643_s26, 5 }
 0x358   : > { %s440_s21 = scalar_lea.vmem %s2609_s13, %s1786_s17 }
 0x35b   : > { %1400 = vrot.lane.b32.xlu0 %v1383_v30, %s2636_s19  ;;  %1466 = vrot.lane.b32.xlu1 %v1450_v1, %s2637_s20 }
 0x35f   : > { %1468 = vrot.lane.b32.xlu0 %v1451_v36, %s2637_s20  ;;  %1534 = vrot.lane.b32.xlu1 %v1518_v2, %s1884_s28 }
 0x363   : > { %1536 = vrot.lane.b32.xlu0 %v1519_v31, %s1884_s28  ;;  %1526 = vrot.lane.b32.xlu1 %v1514_v39, %s1884_s28 }
 0x367   : > { %1532 = vrot.lane.b32.xlu0 %v1517_v48, %s1884_s28  ;;  %1679 = vperm.xlu1 %1850, %v1675_v6  }
 0x36b   : > { %1684 = vperm.xlu0 %1849, %v1676_v40   ;;  %1695 = vperm.xlu1 %1850, %v1691_v41  }
 0x36f   : > { %1700 = vperm.xlu0 %1849, %v1692_v52  }
 0x379   : > { %v1051_v59 = vpop.permute.xlu1 %1050 }
 0x37d   : > { %v1119_v43 = vpop.permute.xlu1 %1118  ;;  %v1055_v9 = vpop.permute.xlu0 %1054 }
 0x381   : > { %v1187_v54 = vpop.permute.xlu1 %1186  ;;  %v1123_v7 = vpop.permute.xlu0 %1122 }
 0x385   : > { %v1255_v11 = vpop.permute.xlu1 %1254  ;;  %v1191_v13 = vpop.permute.xlu0 %1190 }
 0x389   : > { %v1323_v56 = vpop.permute.xlu1 %1322  ;;  %v1259_v10 = vpop.permute.xlu0 %1258 }
 0x38d   : > { %v1391_v15 = vpop.permute.xlu1 %1390  ;;  %v1327_v53 = vpop.permute.xlu0 %1326 }
 0x391   : > { %v1459_v16 = vpop.permute.xlu1 %1458  ;;  %v1395_v19 = vpop.permute.xlu0 %1394 }
 0x395   : > { %v1053_v62 = vpop.permute.xlu1 %1052  ;;  %v1463_v20 = vpop.permute.xlu0 %1462 }
 0x396   : > { %v1062_v23 = vsel %vm546_vm12, %v1051_v59, %v1053_v62  ;;  %v1063_v63 = vsel %vm546_vm12, %v1053_v62, %v1055_v9 }
 0x397   : > { %v1070_v24 = vadd.f32 %v1062_v23, %v2347_v51  ;;  %v1071_v29 = vadd.f32 %v1063_v63, %v2380_v0 }
 0x399   : > { %v1121_v60 = vpop.permute.xlu1 %1120  ;;  %v1531_v58 = vpop.permute.xlu0 %1530 }
 0x39a   : > { %v1130_v34 = vsel %vm594_vm13, %v1119_v43, %v1121_v60  ;;  %v1131_v4 = vsel %vm594_vm13, %v1121_v60, %v1123_v7 }
 0x39b   : > { %v1138_v35 = vadd.f32 %v1130_v34, %v1070_v24  ;;  %v1139_v37 = vadd.f32 %v1131_v4, %v1071_v29 }
 0x39d   : > { %v1189_v47 = vpop.permute.xlu1 %1188  ;;  %v1057_v38 = vpop.permute.xlu0 %1056 }
 0x39e   : > { %v1198_v57 = vsel %vm630_vm14, %v1187_v54, %v1189_v47  ;;  %v1199_v45 = vsel %vm630_vm14, %v1189_v47, %v1191_v13 }
 0x39f   : > { %v1206_v12 = vadd.f32 %v1198_v57, %v1138_v35  ;;  %v1207_v55 = vadd.f32 %v1199_v45, %v1139_v37 }
 0x3a1   : > { %v1257_v32 = vpop.permute.xlu1 %1256  ;;  %v1125_v51 = vpop.permute.xlu0 %1124 }
 0x3a2   : > { %v1266_v0 = vsel %vm665_vm15, %v1255_v11, %v1257_v32  ;;  %v1267_v33 = vsel %vm665_vm15, %v1257_v32, %v1259_v10 }
 0x3a3   : > { %v1274_v61 = vadd.f32 %v1266_v0, %v1206_v12  ;;  %v1275_v17 = vadd.f32 %v1267_v33, %v1207_v55 }
 0x3a5   : > { %v1325_v42 = vpop.permute.xlu1 %1324  ;;  %v1193_v14 = vpop.permute.xlu0 %1192 }
 0x3a6   : > { %v1334_v21 = vsel %vm701_vm0, %v1323_v56, %v1325_v42  ;;  %v1335_v49 = vsel %vm701_vm0, %v1325_v42, %v1327_v53 }
 0x3a7   : > { %v1342_v18 = vadd.f32 %v1334_v21, %v1274_v61  ;;  %v1343_v25 = vadd.f32 %v1335_v49, %v1275_v17 }
 0x3a9   : > { %v1393_v50 = vpop.permute.xlu1 %1392  ;;  %v1261_v22 = vpop.permute.xlu0 %1260 }
 0x3aa   : > { %v1402_v30 = vsel %vm2638_vm4, %v1391_v15, %v1393_v50  ;;  %v1403_v1 = vsel %vm2639_vm5, %v1393_v50, %v1395_v19 }
 0x3ab   : > { %v1410_v26 = vadd.f32 %v1402_v30, %v1342_v18  ;;  %v1411_v36 = vadd.f32 %v1403_v1, %v1343_v25 }
 0x3ad   : > { %v1461_v2 = vpop.permute.xlu1 %1460  ;;  %v1329_v31 = vpop.permute.xlu0 %1328 }
 0x3ae   : > { %v1470_v39 = vsel %vm773_vm2, %v1459_v16, %v1461_v2  ;;  %v1471_v62 = vsel %vm773_vm2, %v1461_v2, %v1463_v20 }
 0x3af   : > { %v1478_v6 = vadd.f32 %v1470_v39, %v1410_v26  ;;  %v1479_v4 = vadd.f32 %v1471_v62, %v1411_v36 }
 0x3b1   : > { %v1529_v48 = vpop.permute.xlu1 %1528  ;;  %v1397_v40 = vpop.permute.xlu0 %1396 }
 0x3b2   : > { %v1539_v29 = vsel %vm809_vm3, %v1529_v48, %v1531_v58 }
 0x3b5   : > { %v1059_v41 = vpop.permute.xlu1 %1058  ;;  %v1465_v52 = vpop.permute.xlu0 %1464 }
 0x3b6   : > { %v1064_v23 = vsel %vm546_vm12, %v1057_v38, %v1059_v41  ;;  %v1547_v38 = vadd.f32 %v1539_v29, %v1479_v4 }
 0x3b7   : > { %v1072_v35 = vadd.f32 %v1064_v23, %v2383_v8 }
 0x3b8   : > { %v1563_v17 = vmul.f32 %v2333_v44, %v1547_v38 }
 0x3b9   : > { %v1127_v59 = vpop.permute.xlu1 %1126  ;;  %v1061_v43 = vpop.permute.xlu0 %1060 }
 0x3ba   : > { %v1065_v10 = vsel %vm546_vm12, %v1059_v41, %v1061_v43  ;;  %v1132_v60 = vsel %vm594_vm13, %v1125_v51, %v1127_v59 }
 0x3bb   : > { %v1073_v53 = vadd.f32 %v1065_v10, %v2386_v27  ;;  %v1140_v45 = vadd.f32 %v1132_v60, %v1072_v35 }
 0x3bd   : > { %v1195_v9 = vpop.permute.xlu1 %1194  ;;  %v1129_v54 = vpop.permute.xlu0 %1128 }
 0x3be   : > { %v1133_v15 = vsel %vm594_vm13, %v1127_v59, %v1129_v54  ;;  %v1200_v57 = vsel %vm630_vm14, %v1193_v14, %v1195_v9 }
 0x3bf   : > { %v1141_v24 = vadd.f32 %v1133_v15, %v1073_v53  ;;  %v1208_v32 = vadd.f32 %v1200_v57, %v1140_v45 }
 0x3c1   : > { %v1263_v7 = vpop.permute.xlu1 %1262  ;;  %v1197_v11 = vpop.permute.xlu0 %1196 }
 0x3c2   : > { %v1201_v63 = vsel %vm630_vm14, %v1195_v9, %v1197_v11  ;;  %v1268_v55 = vsel %vm665_vm15, %v1261_v22, %v1263_v7 }
 0x3c3   : > { %v1209_v37 = vadd.f32 %v1201_v63, %v1141_v24  ;;  %v1276_v42 = vadd.f32 %v1268_v55, %v1208_v32 }
 0x3c5   : > { %v1331_v13 = vpop.permute.xlu1 %1330  ;;  %v1265_v56 = vpop.permute.xlu0 %1264 }
 0x3c6   : > { %v1269_v34 = vsel %vm665_vm15, %v1263_v7, %v1265_v56  ;;  %v1336_v8 = vsel %vm701_vm0, %v1329_v31, %v1331_v13  ;;  %v1579_v31 = vadd.f32 %v2335_v46, %v1563_v17 }
 0x3c7   : > { %v1277_v12 = vadd.f32 %v1269_v34, %v1209_v37  ;;  %v1344_v49 = vadd.f32 %v1336_v8, %v1276_v42 }
 0x3c8   : > { %v1583_v54 = vmax.f32 %v1579_v31, 0.0 }
 0x3c9   : > { %v1399_v16 = vpop.permute.xlu1 %1398  ;;  %v1333_v19 = vpop.permute.xlu0 %1332 }
 0x3ca   : > { %v1337_v20 = vsel %vm701_vm0, %v1331_v13, %v1333_v19  ;;  %v1404_v21 = vsel %vm2641_vm7, %v1397_v40, %v1399_v16  ;;  %v1587_v11 = vmin.f32 %v1583_v54, 6.0 }
 0x3cb   : > { %v1345_v51 = vadd.f32 %v1337_v20, %v1277_v12  ;;  %v1412_v26 = vadd.f32 %v1404_v21, %v1344_v49 }
 0x3cd   : > { %v1467_v27 = vpop.permute.xlu1 %1466  ;;  %v1401_v47 = vpop.permute.xlu0 %1400 }
 0x3ce   : > { %v1405_v58 = vsel %vm2640_vm6, %v1399_v16, %v1401_v47  ;;  %v1472_v22 = vsel %vm773_vm2, %v1465_v52, %v1467_v27 }
 0x3cf   : > { %v1413_v14 = vadd.f32 %v1405_v58, %v1345_v51  ;;  %v1480_v39 = vadd.f32 %v1472_v22, %v1412_v26 }
 0x3d1   : > { %v1535_v0 = vpop.permute.xlu1 %1534  ;;  %v1469_v33 = vpop.permute.xlu0 %1468 }
 0x3d2   : > { %v1473_v61 = vsel %vm773_vm2, %v1467_v27, %v1469_v33 }
 0x3d3   : > { %v1481_v18 = vadd.f32 %v1473_v61, %v1413_v14 }
 0x3d5   : > { %v1527_v25 = vpop.permute.xlu1 %1526  ;;  %v1537_v50 = vpop.permute.xlu0 %1536 }
 0x3d6   : > { %v1538_v30 = vsel %vm809_vm3, %v1527_v25, %v1529_v48  ;;  %v1541_v1 = vsel %vm809_vm3, %v1535_v0, %v1537_v50 }
 0x3d7   : > { %v1546_v36 = vadd.f32 %v1538_v30, %v1478_v6  ;;  %v1549_v2 = vadd.f32 %v1541_v1, %v1481_v18 }
 0x3d9   : > { %v1562_v41 = vmul.f32 %v2333_v44, %v1546_v36  ;;  %v1565_v40 = vmul.f32 %v2337_v28, %v1549_v2  ;;  %v1533_v59 = vpop.permute.xlu0 %1532 }
 0x3da   : > { %v1540_v43 = vsel %vm809_vm3, %v1533_v59, %v1535_v0 }
 0x3db   : > { %v1548_v9 = vadd.f32 %v1540_v43, %v1480_v39  ;;  %v1581_v52 = vadd.f32 %v2353_v5, %v1565_v40  ;;  %v1578_v48 = vadd.f32 %v2335_v46, %v1562_v41  ;;  %v1590_v46 = vld [vmem:[%s2606_s10] sm:$0xff] }
 0x3dd   : > { %v1564_v7 = vmul.f32 %v2337_v28, %v1548_v9  ;;  %v1585_v6 = vmax.f32 %v1581_v52, 0.0  ;;  %v1582_v44 = vmax.f32 %v1578_v48, 0.0  ;;  %v1591_v28 = vld [vmem:[%s2606_s10 + $0x8] sm:$0xff] }
 0x3df   : > { %v1589_v13 = vmin.f32 %v1585_v6, 6.0  ;;  %v1580_v56 = vadd.f32 %v2353_v5, %v1564_v7  ;;  %v1586_v53 = vmin.f32 %v1582_v44, 6.0 }
 0x3e1   : > { %v1787_v10 = vpack.c.bf16 %v1589_v13, %v1587_v11  ;;  %v1584_v15 = vmax.f32 %v1580_v56, 0.0 }
 0x3e3   : > { %1788 = vmatprep.subr.bf16.mxu1 %v1787_v10  ;;  %v1588_v16 = vmin.f32 %v1584_v15, 6.0 }
 0x3e5   : > { %v1789_v19 = vpack.c.bf16 %v1588_v16, %v1586_v53 }
 0x3e6   : > { %v1680_v5 = vpop.permute.xlu1 %1679 }
 0x3e7   : > { %1790 = vmatpush1.bf16.msra.mxu1 %v1789_v19 }
 0x3ea   : > { %1781 = vmatmul.mubr.msk.f32.vlgmr.msra.gmra.mrb[0].mxu1 %vm613_vm8, %v1590_v46  ;;  %v1685_v62 = vpop.permute.xlu0 %1684  ;;  %v1696_v29 = vpop.permute.xlu1 %1695 }
 0x3eb   : > { %1668 = vmatprep.mubr.f32.mxu1 %v1861_v3 }
 0x3ee   : > { %1782 = vmatmul.mubr.msk.f32.gmra.mrb[2].mxu1 %vm613_vm8, %v1591_v28  ;;  %v1701_v27 = vpop.permute.xlu0 %1700 }
 0x4bd   : > { %v1664_v23 = vpop.f32.mrb[0].mxu1 }
 0x4be   : > { %v1687_v63 = vmul.f32 %v1680_v5, %v1664_v23  ;;  %v1666_v24 = vpop.f32.mrb[1].mxu1 }
 0x4bf   : > { %v1688_v60 = vmul.f32 %v1680_v5, %v1666_v24 }
 0x4c0   : > { %v1703_v34 = vadd.f32 %v1696_v29, %v1687_v63 }
 0x4c1   : > { %v1704_v3 = vadd.f32 %v1696_v29, %v1688_v60  ;;  %v1670_v4 = vpop.f32.mrb[2].mxu1 }
 0x4c2   : > { %1707 = vst [vmem:[%s440_s21] sm:$0xff] %v1703_v34  ;;  %v1689_v35 = vmul.f32 %v1685_v62, %v1670_v4  ;;  %v1672_v37 = vpop.f32.mrb[3].mxu1 }
 0x4c3   : > { %1708 = vst [vmem:[%s440_s21 + $0x8] sm:$0xff] %v1704_v3  ;;  %v1690_v47 = vmul.f32 %v1685_v62, %v1672_v37 }
 0x4c4   : > { %v1705_v57 = vadd.f32 %v1701_v27, %v1689_v35 }
 0x4c5   : > { %v1706_v20 = vadd.f32 %v1701_v27, %v1690_v47 }
 0x4c6   : > { %1709 = vst [vmem:[%s440_s21 + $0x10] sm:$0xff] %v1705_v57 }
 0x4c7   : > { %1710 = vst [vmem:[%s440_s21 + $0x18] sm:$0xff] %v1706_v20 }
 0x4c8 PF: > { %s23_s25 = sadd.s32 1, %s1857_s25  }
 0x4c9   : > { %p20_p4 = scmp.ge.s32.totalorder %s23_s25, 4  }
 0x4cb   :  { %22 = sbr.rel (!%p20_p4) target bundleno = 1 (0x1), region = 102 }

</bundles_post_ra>
